<compile_context>
chip_gen: v6e
topology: v6e:2x2x1
jax: 0.10.0
libtpu: 0.0.40
codegen_flags: <defaults>
</compile_context>

<pallas_src>
import math
from functools import partial

import numpy as np
import jax
import jax.numpy as jnp
from jax import lax
from jax.experimental import pallas as pl
from jax.experimental.pallas import tpu as pltpu

NUM_CLASSES = 2      # final Linear(64, 2)
MLP_PAD = 128        # final Linear padded to a full 128-lane output
POOL_RATIO = 0.5     # TopKPooling ratio


# ---------------------------------------------------------------------------
# In-kernel helpers (traced inline into each Pallas kernel body)
# ---------------------------------------------------------------------------
def _adj_norm(a):
    """improved=True GCN normalization of dense A[dst, src]:
    D^-1/2 (A + 2I) D^-1/2, returned factored as (A_hat bf16, D^-1/2 f32) so it
    is applied as dis * (A_hat @ (dis * h)) — no (1, N) transpose, no N x N
    rescale.  Degree = row-sum of A_hat (matches PyG scatter over target)."""
    n = a.shape[0]
    row = lax.broadcasted_iota(jnp.int32, (n, n), 0)
    col = lax.broadcasted_iota(jnp.int32, (n, n), 1)
    a_hat = a + jnp.where(row == col, jnp.float32(2.0), jnp.float32(0.0))
    dis = lax.rsqrt(jnp.sum(a_hat, axis=1, keepdims=True))   # (n, 1); deg >= 2
    return a_hat.astype(jnp.bfloat16), dis


def _gcn(a_bf, dis, h, w_ref, b_ref):
    """One GCNConv: A_norm @ (h @ W) + b.  bf16 MXU inputs, f32 accumulation."""
    h = jnp.dot(h.astype(jnp.bfloat16), w_ref[...],
                preferred_element_type=jnp.float32)
    agg = jnp.dot(a_bf, (dis * h).astype(jnp.bfloat16),
                  preferred_element_type=jnp.float32)
    return dis * agg + b_ref[...]


def _topk_score(h, p_ref):
    """TopKPooling score s = tanh(h . p / ||p||) (p pre-normalized) and the
    score-scaled node features h * s."""
    s = jnp.tanh(jnp.sum(h * p_ref[...], axis=1, keepdims=True))
    return h * s, s


def _select(sel, a, x):
    """Top-k gather as MXU matmuls: A' = S A S^T, X' = S X, with S the one-hot
    row-selection matrix (f32 -> gather is exact)."""
    tmp = jnp.dot(sel, a, preferred_element_type=jnp.float32)
    a_sub = jnp.dot(tmp, sel.T, preferred_element_type=jnp.float32)
    x_sub = jnp.dot(sel, x, preferred_element_type=jnp.float32)
    return a_sub, x_sub


# ---------------------------------------------------------------------------
# Pallas kernels (one per pooling stage; each fuses adjacency normalization,
# two GCNConv layers / GCNConv7 + pooling + MLP, and the TopK score).
# ---------------------------------------------------------------------------
def _stage1_kernel(a_ref, x_ref, w1_ref, b1_ref, w2_ref, b2_ref, p_ref,
                   xs_ref, s_ref):
    # gcn_norm + GCNConv1 + GCNConv2 + TopKPool1 score / feature scaling.
    a_bf, dis = _adj_norm(a_ref[...])
    h = _gcn(a_bf, dis, x_ref[...], w1_ref, b1_ref)
    h = _gcn(a_bf, dis, h, w2_ref, b2_ref)
    xs, s = _topk_score(h, p_ref)
    xs_ref[...] = xs
    s_ref[...] = s   # (N, 1) lane-sparse store: acceptable while N is tiny


def _stage2_kernel(sel_ref, a_ref, xs_ref, w3_ref, b3_ref, w4_ref, b4_ref,
                   p_ref, xs2_ref, s_ref, asub_ref):
    # TopKPool1 gather (as matmuls) + gcn_norm + GCNConv3 + GCNConv4 +
    # TopKPool3 score.  Also emits the selected (unnormalized) adjacency for
    # stage 3.
    a_sub, x_in = _select(sel_ref[...], a_ref[...], xs_ref[...])
    asub_ref[...] = a_sub
    a_bf, dis = _adj_norm(a_sub)
    h = _gcn(a_bf, dis, x_in, w3_ref, b3_ref)
    h = _gcn(a_bf, dis, h, w4_ref, b4_ref)
    xs, s = _topk_score(h, p_ref)
    xs2_ref[...] = xs
    s_ref[...] = s


def _stage3_kernel(sel_ref, a_ref, xs_ref, pool_ref, w7_ref, b7_ref,
                   l1w_ref, l1b_ref, l2w_ref, l2b_ref, l3w_ref, l3b_ref,
                   l4w_ref, l4b_ref, o_ref):
    # TopKPool3 gather + gcn_norm + GCNConv7 + global_mean_pool + post_gcn MLP
    # (BN folded into the Linear weights; Dropout = identity in eval).
    a_sub, x_in = _select(sel_ref[...], a_ref[...], xs_ref[...])
    a_bf, dis = _adj_norm(a_sub)
    h = _gcn(a_bf, dis, x_in, w7_ref, b7_ref)                      # GCNConv7
    g = jnp.dot(pool_ref[...], h, preferred_element_type=jnp.float32)  # mean pool
    g = jnp.maximum(jnp.dot(g.astype(jnp.bfloat16), l1w_ref[...],
                            preferred_element_type=jnp.float32) + l1b_ref[...], 0.0)
    g = jnp.maximum(jnp.dot(g.astype(jnp.bfloat16), l2w_ref[...],
                            preferred_element_type=jnp.float32) + l2b_ref[...], 0.0)
    g = jnp.maximum(jnp.dot(g.astype(jnp.bfloat16), l3w_ref[...],
                            preferred_element_type=jnp.float32) + l3b_ref[...], 0.0)
    o_ref[...] = jnp.dot(g.astype(jnp.bfloat16), l4w_ref[...],
                         preferred_element_type=jnp.float32) + l4b_ref[...]


# ---------------------------------------------------------------------------
# pallas_call wrapper (tiny problem -> full-array blocks, grid=(1,)).
# Per review: do NOT over-tile at these sizes; full blocks fit VMEM easily.
# ---------------------------------------------------------------------------
def _full_spec(shape):
    return pl.BlockSpec(shape, lambda i, n=len(shape): (0,) * n)


def _call(kernel, inputs, out_shapes):
    multi = isinstance(out_shapes, (list, tuple))
    outs = list(out_shapes) if multi else [out_shapes]
    res = pl.pallas_call(
        kernel,
        grid=(1,),
        in_specs=[_full_spec(a.shape) for a in inputs],
        out_specs=[_full_spec(o.shape) for o in outs],
        out_shape=tuple(outs),
        compiler_params=pltpu.CompilerParams(
            dimension_semantics=("arbitrary",)),
    )(*inputs)
    return res if multi else res[0]


# ---------------------------------------------------------------------------
# Host-side glue (data-dependent top-k selection only)
# ---------------------------------------------------------------------------
def _topk_perm(score, graph_sizes, ratio=POOL_RATIO):
    """Per-graph top-k node indices (flat).  Equal-sized graphs (the standard
    PyG batched case) use a single batched lax.top_k."""
    sizes = tuple(int(math.ceil(ratio * n)) for n in graph_sizes)
    if len(set(graph_sizes)) == 1:
        g, n, k = len(graph_sizes), graph_sizes[0], sizes[0]
        _, idx = lax.top_k(score.reshape(g, n), k)
        perm = (idx + (jnp.arange(g, dtype=idx.dtype) * n)[:, None]).reshape(-1)
        return perm, sizes
    # TODO(synk): unequal graph sizes fall back to a per-graph loop (extra dispatches).
    perms, off = [], 0
    for n, k in zip(graph_sizes, sizes):
        _, idx = lax.top_k(score[off:off + n], k)
        perms.append(idx + off)
        off += n
    return jnp.concatenate(perms), sizes


def _selection_matrix(perm, n):
    """One-hot row-selection matrix S (k x n): S[r, perm[r]] = 1."""
    return (perm[:, None] ==
            jnp.arange(n, dtype=perm.dtype)[None, :]).astype(jnp.float32)


def _mean_pool_matrix(sizes):
    """Static [G, K] mean-pool matrix: after contiguous per-graph top-k the
    pooled batch vector is repeat(arange(G), sizes), so this is a constant."""
    g, k = len(sizes), sum(sizes)
    m = np.zeros((g, k), np.float32)
    off = 0
    for gi, c in enumerate(sizes):
        m[gi, off:off + c] = 1.0 / c
        off += c
    return jnp.asarray(m)


# ---------------------------------------------------------------------------
# One-time parameter preparation (hoisted OUT of the per-forward jit)
# ---------------------------------------------------------------------------
def prepare_params(raw):
    def fold_bn(w, b, gamma, beta, mean, var, eps=1e-5):
        scale = gamma / jnp.sqrt(var + eps)
        return ((w * scale[None, :]).astype(jnp.bfloat16),
                ((b - mean) * scale + beta).reshape(1, -1).astype(jnp.float32))

    p = {}
    for name in ("w1", "w2", "w3", "w4", "w7"):
        p[name] = raw[name].astype(jnp.bfloat16)
    for name in ("b1", "b2", "b3", "b4", "b7"):
        p[name] = raw[name].reshape(1, -1).astype(jnp.float32)
    for name in ("p1", "p3"):
        v = raw[name]
        p[name] = (v / jnp.sqrt(jnp.sum(v * v))).reshape(1, -1).astype(jnp.float32)

    p["l1_w"], p["l1_b"] = fold_bn(raw["l1_w"], raw["l1_b"], raw["bn1_g"],
                                   raw["bn1_b"], raw["bn1_m"], raw["bn1_v"])
    p["l2_w"], p["l2_b"] = fold_bn(raw["l2_w"], raw["l2_b"], raw["bn2_g"],
                                   raw["bn2_b"], raw["bn2_m"], raw["bn2_v"])
    p["l3_w"], p["l3_b"] = fold_bn(raw["l3_w"], raw["l3_b"], raw["bn3_g"],
                                   raw["bn3_b"], raw["bn3_m"], raw["bn3_v"])
    out_dim = raw["l4_w"].shape[1]
    p["l4_w"] = jnp.pad(raw["l4_w"], ((0, 0), (0, MLP_PAD - out_dim))).astype(jnp.bfloat16)
    p["l4_b"] = jnp.pad(raw["l4_b"], (0, MLP_PAD - out_dim)).reshape(1, -1).astype(jnp.float32)
    return p


# ---------------------------------------------------------------------------
# Full forward pass (Net_torch_geo), jitted end-to-end
# ---------------------------------------------------------------------------
@partial(jax.jit, static_argnames=("graph_sizes",))
def net_forward(params, batch, x, a, slide_idx, y_target, graph_sizes):
    # batch is assumed to be contiguous per-graph blocks (standard PyG batching);
    # its content is fully captured by the static graph_sizes.
    # slide_idx reindexing in the reference is dead code w.r.t. the returned
    # tensors, so it is skipped to save dispatches.
    del batch, slide_idx
    n0 = x.shape[0]

    # stage 1: gcn_norm + GCNConv1 + GCNConv2 + TopKPool1 score (fused kernel)
    xs1, s1 = _call(
        _stage1_kernel,
        [a, x, params["w1"], params["b1"], params["w2"], params["b2"], params["p1"]],
        [jax.ShapeDtypeStruct((n0, 128), jnp.float32),
         jax.ShapeDtypeStruct((n0, 1), jnp.float32)])
    perm1, sizes1 = _topk_perm(s1.reshape(-1), graph_sizes)
    sel1 = _selection_matrix(perm1, n0)
    k1 = sum(sizes1)

    # stage 2: TopKPool1 gather + gcn_norm + GCNConv3 + GCNConv4 + TopKPool3 score
    xs2, s2, a1 = _call(
        _stage2_kernel,
        [sel1, a, xs1, params["w3"], params["b3"], params["w4"], params["b4"],
         params["p3"]],
        [jax.ShapeDtypeStruct((k1, 128), jnp.float32),
         jax.ShapeDtypeStruct((k1, 1), jnp.float32),
         jax.ShapeDtypeStruct((k1, k1), jnp.float32)])
    perm2, sizes2 = _topk_perm(s2.reshape(-1), sizes1)
    sel2 = _selection_matrix(perm2, k1)

    # stage 3: TopKPool3 gather + gcn_norm + GCNConv7 + global_mean_pool + MLP
    pool = _mean_pool_matrix(sizes2)                       # static constant
    g = len(graph_sizes)
    out = _call(
        _stage3_kernel,
        [sel2, a1, xs2, pool, params["w7"], params["b7"],
         params["l1_w"], params["l1_b"], params["l2_w"], params["l2_b"],
         params["l3_w"], params["l3_b"], params["l4_w"], params["l4_b"]],
        jax.ShapeDtypeStruct((g, MLP_PAD), jnp.float32))

    # pdb.set_trace() in the reference is a debugger breakpoint -> omitted.
    return out[:, :NUM_CLASSES], y_target


# ---------------------------------------------------------------------------
# Deterministic parameter init (shapes from the module's __init__)
# ---------------------------------------------------------------------------
def init_params(key):
    keys = iter(jax.random.split(key, 24))

    def glorot(shape):
        scale = math.sqrt(2.0 / (shape[0] + shape[1]))
        return scale * jax.random.normal(next(keys), shape, dtype=jnp.float32)

    def vec(shape):
        return 0.1 * jax.random.normal(next(keys), shape, dtype=jnp.float32)

    p = {}
    p["w1"], p["b1"] = glorot((512, 256)), vec((256,))
    p["w2"], p["b2"] = glorot((256, 128)), vec((128,))
    p["p1"] = vec((128,))
    p["w3"], p["b3"] = glorot((128, 128)), vec((128,))
    p["w4"], p["b4"] = glorot((128, 128)), vec((128,))
    p["p3"] = vec((128,))
    p["w7"], p["b7"] = glorot((128, 128)), vec((128,))
    p["l1_w"], p["l1_b"] = glorot((128, 128)), vec((128,))
    p["bn1_g"], p["bn1_b"] = jnp.ones((128,), jnp.float32), jnp.zeros((128,), jnp.float32)
    p["bn1_m"], p["bn1_v"] = jnp.zeros((128,), jnp.float32), jnp.ones((128,), jnp.float32)
    p["l2_w"], p["l2_b"] = glorot((128, 128)), vec((128,))
    p["bn2_g"], p["bn2_b"] = jnp.ones((128,), jnp.float32), jnp.zeros((128,), jnp.float32)
    p["bn2_m"], p["bn2_v"] = jnp.zeros((128,), jnp.float32), jnp.ones((128,), jnp.float32)
    p["l3_w"], p["l3_b"] = glorot((128, 64)), vec((64,))
    p["bn3_g"], p["bn3_b"] = jnp.ones((64,), jnp.float32), jnp.zeros((64,), jnp.float32)
    p["bn3_m"], p["bn3_v"] = jnp.zeros((64,), jnp.float32), jnp.ones((64,), jnp.float32)
    p["l4_w"], p["l4_b"] = glorot((64, 2)), vec((2,))
    return p


if __name__ == "__main__":
    key = jax.random.PRNGKey(0)
    k_params, k_x = jax.random.split(key)
    raw_params = init_params(k_params)
    params = prepare_params(raw_params)     # one-time prep, outside the jit

    # Two graphs of 8 nodes each (ring topology, undirected edges).
    graph_sizes = (8, 8)
    N = sum(graph_sizes)
    x = jax.random.normal(k_x, (N, 512), dtype=jnp.float32)

    src, dst, off = [], [], 0
    for n in graph_sizes:
        for i in range(n):
            j = (i + 1) % n
            src += [off + i, off + j]
            dst += [off + j, off + i]
        off += n
    edge_index = np.stack([np.array(src), np.array(dst)])      # [2, E] (src, dst)
    a_np = np.zeros((N, N), np.float32)
    a_np[edge_index[1], edge_index[0]] = 1.0                    # A[dst, src] = 1
    a = jnp.asarray(a_np)

    batch = jnp.asarray(np.repeat(np.arange(len(graph_sizes)),
                                  graph_sizes).astype(np.int32))
    slide_idx = jnp.arange(N, dtype=jnp.int32)
    y_target = jnp.asarray(np.array([0, 1], np.int32))

    out, y = net_forward(params, batch, x, a, slide_idx, y_target, graph_sizes)
    out = jax.block_until_ready(out)
    assert out.shape == (len(graph_sizes), NUM_CLASSES) and out.dtype == jnp.float32
    print("KERNEL_OK")
</pallas_src>

<mosaic_0001>
module attributes {stable_mosaic.version = 11 : i64} {
  func.func @_stage1_kernel(%arg0: i32, %arg1: memref<16x16xf32, #tpu.memory_space<vmem>>, %arg2: memref<16x512xf32, #tpu.memory_space<vmem>>, %arg3: memref<512x256xbf16, #tpu.memory_space<vmem>>, %arg4: memref<1x256xf32, #tpu.memory_space<vmem>>, %arg5: memref<256x128xbf16, #tpu.memory_space<vmem>>, %arg6: memref<1x128xf32, #tpu.memory_space<vmem>>, %arg7: memref<1x128xf32, #tpu.memory_space<vmem>>, %arg8: memref<16x128xf32, #tpu.memory_space<vmem>>, %arg9: memref<16x1xf32, #tpu.memory_space<vmem>>) attributes {dimension_semantics = [#tpu.dimension_semantics<arbitrary>], iteration_bounds = array<i64: 1>, scalar_prefetch = 0 : i64, scratch_operands = 0 : i64, tpu.core_type = #tpu.core_type<tc>, window_params = [{pipeline_mode = #tpu.pipeline_mode<synchronous>, transform_indices = @transform_0, window_bounds = array<i64: 16, 16>}, {pipeline_mode = #tpu.pipeline_mode<synchronous>, transform_indices = @transform_1, window_bounds = array<i64: 16, 512>}, {pipeline_mode = #tpu.pipeline_mode<synchronous>, transform_indices = @transform_2, window_bounds = array<i64: 512, 256>}, {pipeline_mode = #tpu.pipeline_mode<synchronous>, transform_indices = @transform_3, window_bounds = array<i64: 1, 256>}, {pipeline_mode = #tpu.pipeline_mode<synchronous>, transform_indices = @transform_4, window_bounds = array<i64: 256, 128>}, {pipeline_mode = #tpu.pipeline_mode<synchronous>, transform_indices = @transform_5, window_bounds = array<i64: 1, 128>}, {pipeline_mode = #tpu.pipeline_mode<synchronous>, transform_indices = @transform_6, window_bounds = array<i64: 1, 128>}, {pipeline_mode = #tpu.pipeline_mode<synchronous>, transform_indices = @transform_7, window_bounds = array<i64: 16, 128>}, {pipeline_mode = #tpu.pipeline_mode<synchronous>, transform_indices = @transform_8, window_bounds = array<i64: 16, 1>}]} {
    %c0 = arith.constant 0 : index
    %c0_0 = arith.constant 0 : index
    %0 = vector.load %arg1[%c0, %c0_0] : memref<16x16xf32, #tpu.memory_space<vmem>>, vector<16x16xf32>
    %1 = tpu.iota {dimensions = array<i32: 0>} : vector<16x16xi32>
    %2 = tpu.iota {dimensions = array<i32: 1>} : vector<16x16xi32>
    %3 = arith.cmpi eq, %1, %2 : vector<16x16xi32>
    %cst = arith.constant 2.000000e+00 : f32
    %cst_1 = arith.constant 0.000000e+00 : f32
    %4 = vector.broadcast %cst : f32 to vector<16x16xf32>
    %5 = vector.broadcast %cst_1 : f32 to vector<16x16xf32>
    %6 = arith.select %3, %4, %5 : vector<16x16xi1>, vector<16x16xf32>
    %7 = arith.addf %0, %6 : vector<16x16xf32>
    %cst_2 = arith.constant dense<0.000000e+00> : vector<16xf32>
    %8 = vector.multi_reduction <add>, %7, %cst_2 [1] : vector<16x16xf32> to vector<16xf32>
    %9 = vector.shape_cast %8 : vector<16xf32> to vector<16x1xf32>
    %10 = math.rsqrt %9 : vector<16x1xf32>
    %11 = arith.truncf %7 : vector<16x16xf32> to vector<16x16xbf16>
    %c0_3 = arith.constant 0 : index
    %c0_4 = arith.constant 0 : index
    %12 = vector.load %arg2[%c0_3, %c0_4] : memref<16x512xf32, #tpu.memory_space<vmem>>, vector<16x512xf32>
    %13 = arith.truncf %12 : vector<16x512xf32> to vector<16x512xbf16>
    %c0_5 = arith.constant 0 : index
    %c0_6 = arith.constant 0 : index
    %14 = vector.load %arg3[%c0_5, %c0_6] : memref<512x256xbf16, #tpu.memory_space<vmem>>, vector<512x256xbf16>
    %cst_7 = arith.constant dense<0.000000e+00> : vector<16x256xf32>
    %15 = tpu.matmul %13, %14, %cst_7 {dimension_numbers = #tpu.dot_dimension_numbers<[1], [0], [0], [1], [0, 0, 1, 1], [], []>} : vector<16x512xbf16>, vector<512x256xbf16>, vector<16x256xf32> -> vector<16x256xf32>
    %16 = vector.broadcast %10 : vector<16x1xf32> to vector<16x256xf32>
    %17 = arith.mulf %16, %15 : vector<16x256xf32>
    %18 = arith.truncf %17 : vector<16x256xf32> to vector<16x256xbf16>
    %cst_8 = arith.constant dense<0.000000e+00> : vector<16x256xf32>
    %19 = tpu.matmul %11, %18, %cst_8 {dimension_numbers = #tpu.dot_dimension_numbers<[1], [0], [0], [1], [0, 0, 1, 1], [], []>} : vector<16x16xbf16>, vector<16x256xbf16>, vector<16x256xf32> -> vector<16x256xf32>
    %20 = vector.broadcast %10 : vector<16x1xf32> to vector<16x256xf32>
    %21 = arith.mulf %20, %19 : vector<16x256xf32>
    %c0_9 = arith.constant 0 : index
    %c0_10 = arith.constant 0 : index
    %22 = vector.load %arg4[%c0_9, %c0_10] : memref<1x256xf32, #tpu.memory_space<vmem>>, vector<1x256xf32>
    %23 = vector.broadcast %22 : vector<1x256xf32> to vector<16x256xf32>
    %24 = arith.addf %21, %23 : vector<16x256xf32>
    %25 = arith.truncf %24 : vector<16x256xf32> to vector<16x256xbf16>
    %c0_11 = arith.constant 0 : index
    %c0_12 = arith.constant 0 : index
    %26 = vector.load %arg5[%c0_11, %c0_12] : memref<256x128xbf16, #tpu.memory_space<vmem>>, vector<256x128xbf16>
    %cst_13 = arith.constant dense<0.000000e+00> : vector<16x128xf32>
    %27 = tpu.matmul %25, %26, %cst_13 {dimension_numbers = #tpu.dot_dimension_numbers<[1], [0], [0], [1], [0, 0, 1, 1], [], []>} : vector<16x256xbf16>, vector<256x128xbf16>, vector<16x128xf32> -> vector<16x128xf32>
    %28 = vector.broadcast %10 : vector<16x1xf32> to vector<16x128xf32>
    %29 = arith.mulf %28, %27 : vector<16x128xf32>
    %30 = arith.truncf %29 : vector<16x128xf32> to vector<16x128xbf16>
    %cst_14 = arith.constant dense<0.000000e+00> : vector<16x128xf32>
    %31 = tpu.matmul %11, %30, %cst_14 {dimension_numbers = #tpu.dot_dimension_numbers<[1], [0], [0], [1], [0, 0, 1, 1], [], []>} : vector<16x16xbf16>, vector<16x128xbf16>, vector<16x128xf32> -> vector<16x128xf32>
    %32 = vector.broadcast %10 : vector<16x1xf32> to vector<16x128xf32>
    %33 = arith.mulf %32, %31 : vector<16x128xf32>
    %c0_15 = arith.constant 0 : index
    %c0_16 = arith.constant 0 : index
    %34 = vector.load %arg6[%c0_15, %c0_16] : memref<1x128xf32, #tpu.memory_space<vmem>>, vector<1x128xf32>
    %35 = vector.broadcast %34 : vector<1x128xf32> to vector<16x128xf32>
    %36 = arith.addf %33, %35 : vector<16x128xf32>
    %c0_17 = arith.constant 0 : index
    %c0_18 = arith.constant 0 : index
    %37 = vector.load %arg7[%c0_17, %c0_18] : memref<1x128xf32, #tpu.memory_space<vmem>>, vector<1x128xf32>
    %38 = vector.broadcast %37 : vector<1x128xf32> to vector<16x128xf32>
    %39 = arith.mulf %36, %38 : vector<16x128xf32>
    %cst_19 = arith.constant dense<0.000000e+00> : vector<16xf32>
    %40 = vector.multi_reduction <add>, %39, %cst_19 [1] : vector<16x128xf32> to vector<16xf32>
    %41 = vector.shape_cast %40 : vector<16xf32> to vector<16x1xf32>
    %42 = math.tanh %41 : vector<16x1xf32>
    %43 = vector.broadcast %42 : vector<16x1xf32> to vector<16x128xf32>
    %44 = arith.mulf %36, %43 : vector<16x128xf32>
    %c0_20 = arith.constant 0 : index
    %c0_21 = arith.constant 0 : index
    %45 = vector.load %arg8[%c0_20, %c0_21] : memref<16x128xf32, #tpu.memory_space<vmem>>, vector<16x128xf32>
    tpu.vector_store %arg8[%c0_20, %c0_21], %44 {strides = array<i32>} : memref<16x128xf32, #tpu.memory_space<vmem>>, vector<16x128xf32>,
    %c0_22 = arith.constant 0 : index
    %c0_23 = arith.constant 0 : index
    %46 = vector.load %arg9[%c0_22, %c0_23] : memref<16x1xf32, #tpu.memory_space<vmem>>, vector<16x1xf32>
    tpu.vector_store %arg9[%c0_22, %c0_23], %42 {strides = array<i32>} : memref<16x1xf32, #tpu.memory_space<vmem>>, vector<16x1xf32>,
    return
  }
  func.func @transform_0(%arg0: i32) -> (i32, i32) {
    %c0_i32 = arith.constant 0 : i32
    %c0_i32_0 = arith.constant 0 : i32
    %c0_i32_1 = arith.constant 0 : i32
    return %c0_i32, %c0_i32_0 : i32, i32
  }
  func.func @transform_1(%arg0: i32) -> (i32, i32) {
    %c0_i32 = arith.constant 0 : i32
    %c0_i32_0 = arith.constant 0 : i32
    %c0_i32_1 = arith.constant 0 : i32
    return %c0_i32, %c0_i32_0 : i32, i32
  }
  func.func @transform_2(%arg0: i32) -> (i32, i32) {
    %c0_i32 = arith.constant 0 : i32
    %c0_i32_0 = arith.constant 0 : i32
    %c0_i32_1 = arith.constant 0 : i32
    return %c0_i32, %c0_i32_0 : i32, i32
  }
  func.func @transform_3(%arg0: i32) -> (i32, i32) {
    %c0_i32 = arith.constant 0 : i32
    %c0_i32_0 = arith.constant 0 : i32
    %c0_i32_1 = arith.constant 0 : i32
    return %c0_i32, %c0_i32_0 : i32, i32
  }
  func.func @transform_4(%arg0: i32) -> (i32, i32) {
    %c0_i32 = arith.constant 0 : i32
    %c0_i32_0 = arith.constant 0 : i32
    %c0_i32_1 = arith.constant 0 : i32
    return %c0_i32, %c0_i32_0 : i32, i32
  }
  func.func @transform_5(%arg0: i32) -> (i32, i32) {
    %c0_i32 = arith.constant 0 : i32
    %c0_i32_0 = arith.constant 0 : i32
    %c0_i32_1 = arith.constant 0 : i32
    return %c0_i32, %c0_i32_0 : i32, i32
  }
  func.func @transform_6(%arg0: i32) -> (i32, i32) {
    %c0_i32 = arith.constant 0 : i32
    %c0_i32_0 = arith.constant 0 : i32
    %c0_i32_1 = arith.constant 0 : i32
    return %c0_i32, %c0_i32_0 : i32, i32
  }
  func.func @transform_7(%arg0: i32) -> (i32, i32) {
    %c0_i32 = arith.constant 0 : i32
    %c0_i32_0 = arith.constant 0 : i32
    %c0_i32_1 = arith.constant 0 : i32
    return %c0_i32, %c0_i32_0 : i32, i32
  }
  func.func @transform_8(%arg0: i32) -> (i32, i32) {
    %c0_i32 = arith.constant 0 : i32
    %c0_i32_0 = arith.constant 0 : i32
    %c0_i32_1 = arith.constant 0 : i32
    return %c0_i32, %c0_i32_0 : i32, i32
  }
}

module attributes {stable_mosaic.version = 11 : i64} {
  func.func @_stage2_kernel(%arg0: i32, %arg1: memref<8x16xf32, #tpu.memory_space<vmem>>, %arg2: memref<16x16xf32, #tpu.memory_space<vmem>>, %arg3: memref<16x128xf32, #tpu.memory_space<vmem>>, %arg4: memref<128x128xbf16, #tpu.memory_space<vmem>>, %arg5: memref<1x128xf32, #tpu.memory_space<vmem>>, %arg6: memref<128x128xbf16, #tpu.memory_space<vmem>>, %arg7: memref<1x128xf32, #tpu.memory_space<vmem>>, %arg8: memref<1x128xf32, #tpu.memory_space<vmem>>, %arg9: memref<8x128xf32, #tpu.memory_space<vmem>>, %arg10: memref<8x1xf32, #tpu.memory_space<vmem>>, %arg11: memref<8x8xf32, #tpu.memory_space<vmem>>) attributes {dimension_semantics = [#tpu.dimension_semantics<arbitrary>], iteration_bounds = array<i64: 1>, scalar_prefetch = 0 : i64, scratch_operands = 0 : i64, tpu.core_type = #tpu.core_type<tc>, window_params = [{pipeline_mode = #tpu.pipeline_mode<synchronous>, transform_indices = @transform_0, window_bounds = array<i64: 8, 16>}, {pipeline_mode = #tpu.pipeline_mode<synchronous>, transform_indices = @transform_1, window_bounds = array<i64: 16, 16>}, {pipeline_mode = #tpu.pipeline_mode<synchronous>, transform_indices = @transform_2, window_bounds = array<i64: 16, 128>}, {pipeline_mode = #tpu.pipeline_mode<synchronous>, transform_indices = @transform_3, window_bounds = array<i64: 128, 128>}, {pipeline_mode = #tpu.pipeline_mode<synchronous>, transform_indices = @transform_4, window_bounds = array<i64: 1, 128>}, {pipeline_mode = #tpu.pipeline_mode<synchronous>, transform_indices = @transform_5, window_bounds = array<i64: 128, 128>}, {pipeline_mode = #tpu.pipeline_mode<synchronous>, transform_indices = @transform_6, window_bounds = array<i64: 1, 128>}, {pipeline_mode = #tpu.pipeline_mode<synchronous>, transform_indices = @transform_7, window_bounds = array<i64: 1, 128>}, {pipeline_mode = #tpu.pipeline_mode<synchronous>, transform_indices = @transform_8, window_bounds = array<i64: 8, 128>}, {pipeline_mode = #tpu.pipeline_mode<synchronous>, transform_indices = @transform_9, window_bounds = array<i64: 8, 1>}, {pipeline_mode = #tpu.pipeline_mode<synchronous>, transform_indices = @transform_10, window_bounds = array<i64: 8, 8>}]} {
    %c0 = arith.constant 0 : index
    %c0_0 = arith.constant 0 : index
    %0 = vector.load %arg1[%c0, %c0_0] : memref<8x16xf32, #tpu.memory_space<vmem>>, vector<8x16xf32>
    %c0_1 = arith.constant 0 : index
    %c0_2 = arith.constant 0 : index
    %1 = vector.load %arg2[%c0_1, %c0_2] : memref<16x16xf32, #tpu.memory_space<vmem>>, vector<16x16xf32>
    %c0_3 = arith.constant 0 : index
    %c0_4 = arith.constant 0 : index
    %2 = vector.load %arg3[%c0_3, %c0_4] : memref<16x128xf32, #tpu.memory_space<vmem>>, vector<16x128xf32>
    %cst = arith.constant dense<0.000000e+00> : vector<8x16xf32>
    %3 = tpu.matmul %0, %1, %cst {dimension_numbers = #tpu.dot_dimension_numbers<[1], [0], [0], [1], [0, 0, 1, 1], [], []>} : vector<8x16xf32>, vector<16x16xf32>, vector<8x16xf32> -> vector<8x16xf32>
    %4 = tpu.transpose %0, [1, 0] : vector<8x16xf32> -> vector<16x8xf32>
    %cst_5 = arith.constant dense<0.000000e+00> : vector<8x8xf32>
    %5 = tpu.matmul %3, %4, %cst_5 {dimension_numbers = #tpu.dot_dimension_numbers<[1], [0], [0], [1], [0, 0, 1, 1], [], []>} : vector<8x16xf32>, vector<16x8xf32>, vector<8x8xf32> -> vector<8x8xf32>
    %cst_6 = arith.constant dense<0.000000e+00> : vector<8x128xf32>
    %6 = tpu.matmul %0, %2, %cst_6 {dimension_numbers = #tpu.dot_dimension_numbers<[1], [0], [0], [1], [0, 0, 1, 1], [], []>} : vector<8x16xf32>, vector<16x128xf32>, vector<8x128xf32> -> vector<8x128xf32>
    %c0_7 = arith.constant 0 : index
    %c0_8 = arith.constant 0 : index
    %7 = vector.load %arg11[%c0_7, %c0_8] : memref<8x8xf32, #tpu.memory_space<vmem>>, vector<8x8xf32>
    tpu.vector_store %arg11[%c0_7, %c0_8], %5 {strides = array<i32>} : memref<8x8xf32, #tpu.memory_space<vmem>>, vector<8x8xf32>,
    %8 = tpu.iota {dimensions = array<i32: 0>} : vector<8x8xi32>
    %9 = tpu.iota {dimensions = array<i32: 1>} : vector<8x8xi32>
    %10 = arith.cmpi eq, %8, %9 : vector<8x8xi32>
    %cst_9 = arith.constant 2.000000e+00 : f32
    %cst_10 = arith.constant 0.000000e+00 : f32
    %11 = vector.broadcast %cst_9 : f32 to vector<8x8xf32>
    %12 = vector.broadcast %cst_10 : f32 to vector<8x8xf32>
    %13 = arith.select %10, %11, %12 : vector<8x8xi1>, vector<8x8xf32>
    %14 = arith.addf %5, %13 : vector<8x8xf32>
    %cst_11 = arith.constant dense<0.000000e+00> : vector<8xf32>
    %15 = vector.multi_reduction <add>, %14, %cst_11 [1] : vector<8x8xf32> to vector<8xf32>
    %16 = vector.shape_cast %15 : vector<8xf32> to vector<8x1xf32>
    %17 = math.rsqrt %16 : vector<8x1xf32>
    %18 = arith.truncf %14 : vector<8x8xf32> to vector<8x8xbf16>
    %19 = arith.truncf %6 : vector<8x128xf32> to vector<8x128xbf16>
    %c0_12 = arith.constant 0 : index
    %c0_13 = arith.constant 0 : index
    %20 = vector.load %arg4[%c0_12, %c0_13] : memref<128x128xbf16, #tpu.memory_space<vmem>>, vector<128x128xbf16>
    %cst_14 = arith.constant dense<0.000000e+00> : vector<8x128xf32>
    %21 = tpu.matmul %19, %20, %cst_14 {dimension_numbers = #tpu.dot_dimension_numbers<[1], [0], [0], [1], [0, 0, 1, 1], [], []>} : vector<8x128xbf16>, vector<128x128xbf16>, vector<8x128xf32> -> vector<8x128xf32>
    %22 = vector.broadcast %17 : vector<8x1xf32> to vector<8x128xf32>
    %23 = arith.mulf %22, %21 : vector<8x128xf32>
    %24 = arith.truncf %23 : vector<8x128xf32> to vector<8x128xbf16>
    %cst_15 = arith.constant dense<0.000000e+00> : vector<8x128xf32>
    %25 = tpu.matmul %18, %24, %cst_15 {dimension_numbers = #tpu.dot_dimension_numbers<[1], [0], [0], [1], [0, 0, 1, 1], [], []>} : vector<8x8xbf16>, vector<8x128xbf16>, vector<8x128xf32> -> vector<8x128xf32>
    %26 = vector.broadcast %17 : vector<8x1xf32> to vector<8x128xf32>
    %27 = arith.mulf %26, %25 : vector<8x128xf32>
    %c0_16 = arith.constant 0 : index
    %c0_17 = arith.constant 0 : index
    %28 = vector.load %arg5[%c0_16, %c0_17] : memref<1x128xf32, #tpu.memory_space<vmem>>, vector<1x128xf32>
    %29 = vector.broadcast %28 : vector<1x128xf32> to vector<8x128xf32>
    %30 = arith.addf %27, %29 : vector<8x128xf32>
    %31 = arith.truncf %30 : vector<8x128xf32> to vector<8x128xbf16>
    %c0_18 = arith.constant 0 : index
    %c0_19 = arith.constant 0 : index
    %32 = vector.load %arg6[%c0_18, %c0_19] : memref<128x128xbf16, #tpu.memory_space<vmem>>, vector<128x128xbf16>
    %cst_20 = arith.constant dense<0.000000e+00> : vector<8x128xf32>
    %33 = tpu.matmul %31, %32, %cst_20 {dimension_numbers = #tpu.dot_dimension_numbers<[1], [0], [0], [1], [0, 0, 1, 1], [], []>} : vector<8x128xbf16>, vector<128x128xbf16>, vector<8x128xf32> -> vector<8x128xf32>
    %34 = vector.broadcast %17 : vector<8x1xf32> to vector<8x128xf32>
    %35 = arith.mulf %34, %33 : vector<8x128xf32>
    %36 = arith.truncf %35 : vector<8x128xf32> to vector<8x128xbf16>
    %cst_21 = arith.constant dense<0.000000e+00> : vector<8x128xf32>
    %37 = tpu.matmul %18, %36, %cst_21 {dimension_numbers = #tpu.dot_dimension_numbers<[1], [0], [0], [1], [0, 0, 1, 1], [], []>} : vector<8x8xbf16>, vector<8x128xbf16>, vector<8x128xf32> -> vector<8x128xf32>
    %38 = vector.broadcast %17 : vector<8x1xf32> to vector<8x128xf32>
    %39 = arith.mulf %38, %37 : vector<8x128xf32>
    %c0_22 = arith.constant 0 : index
    %c0_23 = arith.constant 0 : index
    %40 = vector.load %arg7[%c0_22, %c0_23] : memref<1x128xf32, #tpu.memory_space<vmem>>, vector<1x128xf32>
    %41 = vector.broadcast %40 : vector<1x128xf32> to vector<8x128xf32>
    %42 = arith.addf %39, %41 : vector<8x128xf32>
    %c0_24 = arith.constant 0 : index
    %c0_25 = arith.constant 0 : index
    %43 = vector.load %arg8[%c0_24, %c0_25] : memref<1x128xf32, #tpu.memory_space<vmem>>, vector<1x128xf32>
    %44 = vector.broadcast %43 : vector<1x128xf32> to vector<8x128xf32>
    %45 = arith.mulf %42, %44 : vector<8x128xf32>
    %cst_26 = arith.constant dense<0.000000e+00> : vector<8xf32>
    %46 = vector.multi_reduction <add>, %45, %cst_26 [1] : vector<8x128xf32> to vector<8xf32>
    %47 = vector.shape_cast %46 : vector<8xf32> to vector<8x1xf32>
    %48 = math.tanh %47 : vector<8x1xf32>
    %49 = vector.broadcast %48 : vector<8x1xf32> to vector<8x128xf32>
    %50 = arith.mulf %42, %49 : vector<8x128xf32>
    %c0_27 = arith.constant 0 : index
    %c0_28 = arith.constant 0 : index
    %51 = vector.load %arg9[%c0_27, %c0_28] : memref<8x128xf32, #tpu.memory_space<vmem>>, vector<8x128xf32>
    tpu.vector_store %arg9[%c0_27, %c0_28], %50 {strides = array<i32>} : memref<8x128xf32, #tpu.memory_space<vmem>>, vector<8x128xf32>,
    %c0_29 = arith.constant 0 : index
    %c0_30 = arith.constant 0 : index
    %52 = vector.load %arg10[%c0_29, %c0_30] : memref<8x1xf32, #tpu.memory_space<vmem>>, vector<8x1xf32>
    tpu.vector_store %arg10[%c0_29, %c0_30], %48 {strides = array<i32>} : memref<8x1xf32, #tpu.memory_space<vmem>>, vector<8x1xf32>,
    return
  }
  func.func @transform_0(%arg0: i32) -> (i32, i32) {
    %c0_i32 = arith.constant 0 : i32
    %c0_i32_0 = arith.constant 0 : i32
    %c0_i32_1 = arith.constant 0 : i32
    return %c0_i32, %c0_i32_0 : i32, i32
  }
  func.func @transform_1(%arg0: i32) -> (i32, i32) {
    %c0_i32 = arith.constant 0 : i32
    %c0_i32_0 = arith.constant 0 : i32
    %c0_i32_1 = arith.constant 0 : i32
    return %c0_i32, %c0_i32_0 : i32, i32
  }
  func.func @transform_2(%arg0: i32) -> (i32, i32) {
    %c0_i32 = arith.constant 0 : i32
    %c0_i32_0 = arith.constant 0 : i32
    %c0_i32_1 = arith.constant 0 : i32
    return %c0_i32, %c0_i32_0 : i32, i32
  }
  func.func @transform_3(%arg0: i32) -> (i32, i32) {
    %c0_i32 = arith.constant 0 : i32
    %c0_i32_0 = arith.constant 0 : i32
    %c0_i32_1 = arith.constant 0 : i32
    return %c0_i32, %c0_i32_0 : i32, i32
  }
  func.func @transform_4(%arg0: i32) -> (i32, i32) {
    %c0_i32 = arith.constant 0 : i32
    %c0_i32_0 = arith.constant 0 : i32
    %c0_i32_1 = arith.constant 0 : i32
    return %c0_i32, %c0_i32_0 : i32, i32
  }
  func.func @transform_5(%arg0: i32) -> (i32, i32) {
    %c0_i32 = arith.constant 0 : i32
    %c0_i32_0 = arith.constant 0 : i32
    %c0_i32_1 = arith.constant 0 : i32
    return %c0_i32, %c0_i32_0 : i32, i32
  }
  func.func @transform_6(%arg0: i32) -> (i32, i32) {
    %c0_i32 = arith.constant 0 : i32
    %c0_i32_0 = arith.constant 0 : i32
    %c0_i32_1 = arith.constant 0 : i32
    return %c0_i32, %c0_i32_0 : i32, i32
  }
  func.func @transform_7(%arg0: i32) -> (i32, i32) {
    %c0_i32 = arith.constant 0 : i32
    %c0_i32_0 = arith.constant 0 : i32
    %c0_i32_1 = arith.constant 0 : i32
    return %c0_i32, %c0_i32_0 : i32, i32
  }
  func.func @transform_8(%arg0: i32) -> (i32, i32) {
    %c0_i32 = arith.constant 0 : i32
    %c0_i32_0 = arith.constant 0 : i32
    %c0_i32_1 = arith.constant 0 : i32
    return %c0_i32, %c0_i32_0 : i32, i32
  }
  func.func @transform_9(%arg0: i32) -> (i32, i32) {
    %c0_i32 = arith.constant 0 : i32
    %c0_i32_0 = arith.constant 0 : i32
    %c0_i32_1 = arith.constant 0 : i32
    return %c0_i32, %c0_i32_0 : i32, i32
  }
  func.func @transform_10(%arg0: i32) -> (i32, i32) {
    %c0_i32 = arith.constant 0 : i32
    %c0_i32_0 = arith.constant 0 : i32
    %c0_i32_1 = arith.constant 0 : i32
    return %c0_i32, %c0_i32_0 : i32, i32
  }
}

module attributes {stable_mosaic.version = 11 : i64} {
  func.func @_stage3_kernel(%arg0: i32, %arg1: memref<4x8xf32, #tpu.memory_space<vmem>>, %arg2: memref<8x8xf32, #tpu.memory_space<vmem>>, %arg3: memref<8x128xf32, #tpu.memory_space<vmem>>, %arg4: memref<2x4xf32, #tpu.memory_space<vmem>>, %arg5: memref<128x128xbf16, #tpu.memory_space<vmem>>, %arg6: memref<1x128xf32, #tpu.memory_space<vmem>>, %arg7: memref<128x128xbf16, #tpu.memory_space<vmem>>, %arg8: memref<1x128xf32, #tpu.memory_space<vmem>>, %arg9: memref<128x128xbf16, #tpu.memory_space<vmem>>, %arg10: memref<1x128xf32, #tpu.memory_space<vmem>>, %arg11: memref<128x64xbf16, #tpu.memory_space<vmem>>, %arg12: memref<1x64xf32, #tpu.memory_space<vmem>>, %arg13: memref<64x128xbf16, #tpu.memory_space<vmem>>, %arg14: memref<1x128xf32, #tpu.memory_space<vmem>>, %arg15: memref<2x128xf32, #tpu.memory_space<vmem>>) attributes {dimension_semantics = [#tpu.dimension_semantics<arbitrary>], iteration_bounds = array<i64: 1>, scalar_prefetch = 0 : i64, scratch_operands = 0 : i64, tpu.core_type = #tpu.core_type<tc>, window_params = [{pipeline_mode = #tpu.pipeline_mode<synchronous>, transform_indices = @transform_0, window_bounds = array<i64: 4, 8>}, {pipeline_mode = #tpu.pipeline_mode<synchronous>, transform_indices = @transform_1, window_bounds = array<i64: 8, 8>}, {pipeline_mode = #tpu.pipeline_mode<synchronous>, transform_indices = @transform_2, window_bounds = array<i64: 8, 128>}, {pipeline_mode = #tpu.pipeline_mode<synchronous>, transform_indices = @transform_3, window_bounds = array<i64: 2, 4>}, {pipeline_mode = #tpu.pipeline_mode<synchronous>, transform_indices = @transform_4, window_bounds = array<i64: 128, 128>}, {pipeline_mode = #tpu.pipeline_mode<synchronous>, transform_indices = @transform_5, window_bounds = array<i64: 1, 128>}, {pipeline_mode = #tpu.pipeline_mode<synchronous>, transform_indices = @transform_6, window_bounds = array<i64: 128, 128>}, {pipeline_mode = #tpu.pipeline_mode<synchronous>, transform_indices = @transform_7, window_bounds = array<i64: 1, 128>}, {pipeline_mode = #tpu.pipeline_mode<synchronous>, transform_indices = @transform_8, window_bounds = array<i64: 128, 128>}, {pipeline_mode = #tpu.pipeline_mode<synchronous>, transform_indices = @transform_9, window_bounds = array<i64: 1, 128>}, {pipeline_mode = #tpu.pipeline_mode<synchronous>, transform_indices = @transform_10, window_bounds = array<i64: 128, 64>}, {pipeline_mode = #tpu.pipeline_mode<synchronous>, transform_indices = @transform_11, window_bounds = array<i64: 1, 64>}, {pipeline_mode = #tpu.pipeline_mode<synchronous>, transform_indices = @transform_12, window_bounds = array<i64: 64, 128>}, {pipeline_mode = #tpu.pipeline_mode<synchronous>, transform_indices = @transform_13, window_bounds = array<i64: 1, 128>}, {pipeline_mode = #tpu.pipeline_mode<synchronous>, transform_indices = @transform_14, window_bounds = array<i64: 2, 128>}]} {
    %c0 = arith.constant 0 : index
    %c0_0 = arith.constant 0 : index
    %0 = vector.load %arg1[%c0, %c0_0] : memref<4x8xf32, #tpu.memory_space<vmem>>, vector<4x8xf32>
    %c0_1 = arith.constant 0 : index
    %c0_2 = arith.constant 0 : index
    %1 = vector.load %arg2[%c0_1, %c0_2] : memref<8x8xf32, #tpu.memory_space<vmem>>, vector<8x8xf32>
    %c0_3 = arith.constant 0 : index
    %c0_4 = arith.constant 0 : index
    %2 = vector.load %arg3[%c0_3, %c0_4] : memref<8x128xf32, #tpu.memory_space<vmem>>, vector<8x128xf32>
    %cst = arith.constant dense<0.000000e+00> : vector<4x8xf32>
    %3 = tpu.matmul %0, %1, %cst {dimension_numbers = #tpu.dot_dimension_numbers<[1], [0], [0], [1], [0, 0, 1, 1], [], []>} : vector<4x8xf32>, vector<8x8xf32>, vector<4x8xf32> -> vector<4x8xf32>
    %4 = tpu.transpose %0, [1, 0] : vector<4x8xf32> -> vector<8x4xf32>
    %cst_5 = arith.constant dense<0.000000e+00> : vector<4x4xf32>
    %5 = tpu.matmul %3, %4, %cst_5 {dimension_numbers = #tpu.dot_dimension_numbers<[1], [0], [0], [1], [0, 0, 1, 1], [], []>} : vector<4x8xf32>, vector<8x4xf32>, vector<4x4xf32> -> vector<4x4xf32>
    %cst_6 = arith.constant dense<0.000000e+00> : vector<4x128xf32>
    %6 = tpu.matmul %0, %2, %cst_6 {dimension_numbers = #tpu.dot_dimension_numbers<[1], [0], [0], [1], [0, 0, 1, 1], [], []>} : vector<4x8xf32>, vector<8x128xf32>, vector<4x128xf32> -> vector<4x128xf32>
    %7 = tpu.iota {dimensions = array<i32: 0>} : vector<4x4xi32>
    %8 = tpu.iota {dimensions = array<i32: 1>} : vector<4x4xi32>
    %9 = arith.cmpi eq, %7, %8 : vector<4x4xi32>
    %cst_7 = arith.constant 2.000000e+00 : f32
    %cst_8 = arith.constant 0.000000e+00 : f32
    %10 = vector.broadcast %cst_7 : f32 to vector<4x4xf32>
    %11 = vector.broadcast %cst_8 : f32 to vector<4x4xf32>
    %12 = arith.select %9, %10, %11 : vector<4x4xi1>, vector<4x4xf32>
    %13 = arith.addf %5, %12 : vector<4x4xf32>
    %cst_9 = arith.constant dense<0.000000e+00> : vector<4xf32>
    %14 = vector.multi_reduction <add>, %13, %cst_9 [1] : vector<4x4xf32> to vector<4xf32>
    %15 = vector.shape_cast %14 : vector<4xf32> to vector<4x1xf32>
    %16 = math.rsqrt %15 : vector<4x1xf32>
    %17 = arith.truncf %13 : vector<4x4xf32> to vector<4x4xbf16>
    %18 = arith.truncf %6 : vector<4x128xf32> to vector<4x128xbf16>
    %c0_10 = arith.constant 0 : index
    %c0_11 = arith.constant 0 : index
    %19 = vector.load %arg5[%c0_10, %c0_11] : memref<128x128xbf16, #tpu.memory_space<vmem>>, vector<128x128xbf16>
    %cst_12 = arith.constant dense<0.000000e+00> : vector<4x128xf32>
    %20 = tpu.matmul %18, %19, %cst_12 {dimension_numbers = #tpu.dot_dimension_numbers<[1], [0], [0], [1], [0, 0, 1, 1], [], []>} : vector<4x128xbf16>, vector<128x128xbf16>, vector<4x128xf32> -> vector<4x128xf32>
    %21 = vector.broadcast %16 : vector<4x1xf32> to vector<4x128xf32>
    %22 = arith.mulf %21, %20 : vector<4x128xf32>
    %23 = arith.truncf %22 : vector<4x128xf32> to vector<4x128xbf16>
    %cst_13 = arith.constant dense<0.000000e+00> : vector<4x128xf32>
    %24 = tpu.matmul %17, %23, %cst_13 {dimension_numbers = #tpu.dot_dimension_numbers<[1], [0], [0], [1], [0, 0, 1, 1], [], []>} : vector<4x4xbf16>, vector<4x128xbf16>, vector<4x128xf32> -> vector<4x128xf32>
    %25 = vector.broadcast %16 : vector<4x1xf32> to vector<4x128xf32>
    %26 = arith.mulf %25, %24 : vector<4x128xf32>
    %c0_14 = arith.constant 0 : index
    %c0_15 = arith.constant 0 : index
    %27 = vector.load %arg6[%c0_14, %c0_15] : memref<1x128xf32, #tpu.memory_space<vmem>>, vector<1x128xf32>
    %28 = vector.broadcast %27 : vector<1x128xf32> to vector<4x128xf32>
    %29 = arith.addf %26, %28 : vector<4x128xf32>
    %c0_16 = arith.constant 0 : index
    %c0_17 = arith.constant 0 : index
    %30 = vector.load %arg4[%c0_16, %c0_17] : memref<2x4xf32, #tpu.memory_space<vmem>>, vector<2x4xf32>
    %cst_18 = arith.constant dense<0.000000e+00> : vector<2x128xf32>
    %31 = tpu.matmul %30, %29, %cst_18 {dimension_numbers = #tpu.dot_dimension_numbers<[1], [0], [0], [1], [0, 0, 1, 1], [], []>} : vector<2x4xf32>, vector<4x128xf32>, vector<2x128xf32> -> vector<2x128xf32>
    %32 = arith.truncf %31 : vector<2x128xf32> to vector<2x128xbf16>
    %c0_19 = arith.constant 0 : index
    %c0_20 = arith.constant 0 : index
    %33 = vector.load %arg7[%c0_19, %c0_20] : memref<128x128xbf16, #tpu.memory_space<vmem>>, vector<128x128xbf16>
    %cst_21 = arith.constant dense<0.000000e+00> : vector<2x128xf32>
    %34 = tpu.matmul %32, %33, %cst_21 {dimension_numbers = #tpu.dot_dimension_numbers<[1], [0], [0], [1], [0, 0, 1, 1], [], []>} : vector<2x128xbf16>, vector<128x128xbf16>, vector<2x128xf32> -> vector<2x128xf32>
    %c0_22 = arith.constant 0 : index
    %c0_23 = arith.constant 0 : index
    %35 = vector.load %arg8[%c0_22, %c0_23] : memref<1x128xf32, #tpu.memory_space<vmem>>, vector<1x128xf32>
    %36 = vector.broadcast %35 : vector<1x128xf32> to vector<2x128xf32>
    %37 = arith.addf %34, %36 : vector<2x128xf32>
    %cst_24 = arith.constant 0.000000e+00 : f32
    %38 = vector.broadcast %cst_24 : f32 to vector<2x128xf32>
    %39 = arith.maximumf %37, %38 : vector<2x128xf32>
    %40 = arith.truncf %39 : vector<2x128xf32> to vector<2x128xbf16>
    %c0_25 = arith.constant 0 : index
    %c0_26 = arith.constant 0 : index
    %41 = vector.load %arg9[%c0_25, %c0_26] : memref<128x128xbf16, #tpu.memory_space<vmem>>, vector<128x128xbf16>
    %cst_27 = arith.constant dense<0.000000e+00> : vector<2x128xf32>
    %42 = tpu.matmul %40, %41, %cst_27 {dimension_numbers = #tpu.dot_dimension_numbers<[1], [0], [0], [1], [0, 0, 1, 1], [], []>} : vector<2x128xbf16>, vector<128x128xbf16>, vector<2x128xf32> -> vector<2x128xf32>
    %c0_28 = arith.constant 0 : index
    %c0_29 = arith.constant 0 : index
    %43 = vector.load %arg10[%c0_28, %c0_29] : memref<1x128xf32, #tpu.memory_space<vmem>>, vector<1x128xf32>
    %44 = vector.broadcast %43 : vector<1x128xf32> to vector<2x128xf32>
    %45 = arith.addf %42, %44 : vector<2x128xf32>
    %cst_30 = arith.constant 0.000000e+00 : f32
    %46 = vector.broadcast %cst_30 : f32 to vector<2x128xf32>
    %47 = arith.maximumf %45, %46 : vector<2x128xf32>
    %48 = arith.truncf %47 : vector<2x128xf32> to vector<2x128xbf16>
    %c0_31 = arith.constant 0 : index
    %c0_32 = arith.constant 0 : index
    %49 = vector.load %arg11[%c0_31, %c0_32] : memref<128x64xbf16, #tpu.memory_space<vmem>>, vector<128x64xbf16>
    %cst_33 = arith.constant dense<0.000000e+00> : vector<2x64xf32>
    %50 = tpu.matmul %48, %49, %cst_33 {dimension_numbers = #tpu.dot_dimension_numbers<[1], [0], [0], [1], [0, 0, 1, 1], [], []>} : vector<2x128xbf16>, vector<128x64xbf16>, vector<2x64xf32> -> vector<2x64xf32>
    %c0_34 = arith.constant 0 : index
    %c0_35 = arith.constant 0 : index
    %51 = vector.load %arg12[%c0_34, %c0_35] : memref<1x64xf32, #tpu.memory_space<vmem>>, vector<1x64xf32>
    %52 = vector.broadcast %51 : vector<1x64xf32> to vector<2x64xf32>
    %53 = arith.addf %50, %52 : vector<2x64xf32>
    %cst_36 = arith.constant 0.000000e+00 : f32
    %54 = vector.broadcast %cst_36 : f32 to vector<2x64xf32>
    %55 = arith.maximumf %53, %54 : vector<2x64xf32>
    %56 = arith.truncf %55 : vector<2x64xf32> to vector<2x64xbf16>
    %c0_37 = arith.constant 0 : index
    %c0_38 = arith.constant 0 : index
    %57 = vector.load %arg13[%c0_37, %c0_38] : memref<64x128xbf16, #tpu.memory_space<vmem>>, vector<64x128xbf16>
    %cst_39 = arith.constant dense<0.000000e+00> : vector<2x128xf32>
    %58 = tpu.matmul %56, %57, %cst_39 {dimension_numbers = #tpu.dot_dimension_numbers<[1], [0], [0], [1], [0, 0, 1, 1], [], []>} : vector<2x64xbf16>, vector<64x128xbf16>, vector<2x128xf32> -> vector<2x128xf32>
    %c0_40 = arith.constant 0 : index
    %c0_41 = arith.constant 0 : index
    %59 = vector.load %arg14[%c0_40, %c0_41] : memref<1x128xf32, #tpu.memory_space<vmem>>, vector<1x128xf32>
    %60 = vector.broadcast %59 : vector<1x128xf32> to vector<2x128xf32>
    %61 = arith.addf %58, %60 : vector<2x128xf32>
    %c0_42 = arith.constant 0 : index
    %c0_43 = arith.constant 0 : index
    %62 = vector.load %arg15[%c0_42, %c0_43] : memref<2x128xf32, #tpu.memory_space<vmem>>, vector<2x128xf32>
    tpu.vector_store %arg15[%c0_42, %c0_43], %61 {strides = array<i32>} : memref<2x128xf32, #tpu.memory_space<vmem>>, vector<2x128xf32>,
    return
  }
  func.func @transform_0(%arg0: i32) -> (i32, i32) {
    %c0_i32 = arith.constant 0 : i32
    %c0_i32_0 = arith.constant 0 : i32
    %c0_i32_1 = arith.constant 0 : i32
    return %c0_i32, %c0_i32_0 : i32, i32
  }
  func.func @transform_1(%arg0: i32) -> (i32, i32) {
    %c0_i32 = arith.constant 0 : i32
    %c0_i32_0 = arith.constant 0 : i32
    %c0_i32_1 = arith.constant 0 : i32
    return %c0_i32, %c0_i32_0 : i32, i32
  }
  func.func @transform_2(%arg0: i32) -> (i32, i32) {
    %c0_i32 = arith.constant 0 : i32
    %c0_i32_0 = arith.constant 0 : i32
    %c0_i32_1 = arith.constant 0 : i32
    return %c0_i32, %c0_i32_0 : i32, i32
  }
  func.func @transform_3(%arg0: i32) -> (i32, i32) {
    %c0_i32 = arith.constant 0 : i32
    %c0_i32_0 = arith.constant 0 : i32
    %c0_i32_1 = arith.constant 0 : i32
    return %c0_i32, %c0_i32_0 : i32, i32
  }
  func.func @transform_4(%arg0: i32) -> (i32, i32) {
    %c0_i32 = arith.constant 0 : i32
    %c0_i32_0 = arith.constant 0 : i32
    %c0_i32_1 = arith.constant 0 : i32
    return %c0_i32, %c0_i32_0 : i32, i32
  }
  func.func @transform_5(%arg0: i32) -> (i32, i32) {
    %c0_i32 = arith.constant 0 : i32
    %c0_i32_0 = arith.constant 0 : i32
    %c0_i32_1 = arith.constant 0 : i32
    return %c0_i32, %c0_i32_0 : i32, i32
  }
  func.func @transform_6(%arg0: i32) -> (i32, i32) {
    %c0_i32 = arith.constant 0 : i32
    %c0_i32_0 = arith.constant 0 : i32
    %c0_i32_1 = arith.constant 0 : i32
    return %c0_i32, %c0_i32_0 : i32, i32
  }
  func.func @transform_7(%arg0: i32) -> (i32, i32) {
    %c0_i32 = arith.constant 0 : i32
    %c0_i32_0 = arith.constant 0 : i32
    %c0_i32_1 = arith.constant 0 : i32
    return %c0_i32, %c0_i32_0 : i32, i32
  }
  func.func @transform_8(%arg0: i32) -> (i32, i32) {
    %c0_i32 = arith.constant 0 : i32
    %c0_i32_0 = arith.constant 0 : i32
    %c0_i32_1 = arith.constant 0 : i32
    return %c0_i32, %c0_i32_0 : i32, i32
  }
  func.func @transform_9(%arg0: i32) -> (i32, i32) {
    %c0_i32 = arith.constant 0 : i32
    %c0_i32_0 = arith.constant 0 : i32
    %c0_i32_1 = arith.constant 0 : i32
    return %c0_i32, %c0_i32_0 : i32, i32
  }
  func.func @transform_10(%arg0: i32) -> (i32, i32) {
    %c0_i32 = arith.constant 0 : i32
    %c0_i32_0 = arith.constant 0 : i32
    %c0_i32_1 = arith.constant 0 : i32
    return %c0_i32, %c0_i32_0 : i32, i32
  }
  func.func @transform_11(%arg0: i32) -> (i32, i32) {
    %c0_i32 = arith.constant 0 : i32
    %c0_i32_0 = arith.constant 0 : i32
    %c0_i32_1 = arith.constant 0 : i32
    return %c0_i32, %c0_i32_0 : i32, i32
  }
  func.func @transform_12(%arg0: i32) -> (i32, i32) {
    %c0_i32 = arith.constant 0 : i32
    %c0_i32_0 = arith.constant 0 : i32
    %c0_i32_1 = arith.constant 0 : i32
    return %c0_i32, %c0_i32_0 : i32, i32
  }
  func.func @transform_13(%arg0: i32) -> (i32, i32) {
    %c0_i32 = arith.constant 0 : i32
    %c0_i32_0 = arith.constant 0 : i32
    %c0_i32_1 = arith.constant 0 : i32
    return %c0_i32, %c0_i32_0 : i32, i32
  }
  func.func @transform_14(%arg0: i32) -> (i32, i32) {
    %c0_i32 = arith.constant 0 : i32
    %c0_i32_0 = arith.constant 0 : i32
    %c0_i32_1 = arith.constant 0 : i32
    return %c0_i32, %c0_i32_0 : i32, i32
  }
}

</mosaic_0001>

<bundles_post_ra>
// kernel: eq.15
= control target key start
LH: loop header
LB: loop body
LE: loop exit
PB: predicated region body
PF: predicated region fallthrough
CT: control target
= control target key end

     0   :  { %vm8_vm0 = vcmask 31744   ;;  %vm14_vm1 = vcmask 64544   ;;  %s42_s0 = inlined_call_operand.vmem [shape: s32[2,4], index: 0, kind: input, shape index: {}]   ;;  %s43_s1 = inlined_call_operand.vmem [shape: s32[8], index: 1, kind: output, shape index: {}]  }
   0x1   :  { %v5_v0 = vld [vmem:[%s42_s0] sm:$0x3]  ;;  %s25_s0 = smov 4  }
   0x2   :  { %6 = vst [vmem:[#allocation1] sm:$0x3] %v5_v0 }
   0x9   :  { %v11_v1 = vld [vmem:[#allocation1 + $0x1] sm:$0x1]   ;;  %v7_v2 = vld [vmem:[#allocation1] sm:$0x1]  }
   0xa   :  { %12 = vrot.lane.b32.xlu0 %v11_v1, %s25_s0  ;;  %9 = vst.msk [vmem:[#allocation0] sm:$0x1] %vm8_vm0, %v7_v2  }
  0x7c   :  { %v13_v3 = vpop.permute.xlu0 %12  }
  0x7d   :  { %15 = vst.msk [vmem:[#allocation0] sm:$0x1] %vm14_vm1, %v13_v3  }
  0x84   :  { %v20_v4 = vld [vmem:[#allocation0] sm:$0x1] }
  0x85   :  { %23 = vst [vmem:[%s43_s1] sm:$0x1] %v20_v4 }

// kernel: eq.22
= control target key start
LH: loop header
LB: loop body
LE: loop exit
PB: predicated region body
PF: predicated region fallthrough
CT: control target
= control target key end

     0   :  { %vm8_vm0 = vcmask 15360   ;;  %vm14_vm1 = vcmask 31760   ;;  %s42_s0 = inlined_call_operand.vmem [shape: s32[2,2], index: 0, kind: input, shape index: {}]   ;;  %s43_s1 = inlined_call_operand.vmem [shape: s32[4], index: 1, kind: output, shape index: {}]  }
   0x1   :  { %v5_v0 = vld [vmem:[%s42_s0] sm:$0x3]  ;;  %s25_s0 = smov 2  }
   0x2   :  { %6 = vst [vmem:[#allocation1] sm:$0x3] %v5_v0 }
   0x9   :  { %v11_v1 = vld [vmem:[#allocation1 + $0x1] sm:$0x1]   ;;  %v7_v2 = vld [vmem:[#allocation1] sm:$0x1]  }
   0xa   :  { %12 = vrot.lane.b32.xlu0 %v11_v1, %s25_s0  ;;  %9 = vst.msk [vmem:[#allocation0] sm:$0x1] %vm8_vm0, %v7_v2  }
  0x7c   :  { %v13_v3 = vpop.permute.xlu0 %12  }
  0x7d   :  { %15 = vst.msk [vmem:[#allocation0] sm:$0x1] %vm14_vm1, %v13_v3  }
  0x84   :  { %v20_v4 = vld [vmem:[#allocation0] sm:$0x1] }
  0x85   :  { %23 = vst [vmem:[%s43_s1] sm:$0x1] %v20_v4 }

// kernel: net_forward.4
= control target key start
LH: loop header
LB: loop body
LE: loop exit
PB: predicated region body
PF: predicated region fallthrough
CT: control target
= control target key end

     0   :  { %v766_v0 = vmov 0.0   ;;  %vm767_vm0 = vmmov 0   ;;  %vm38_vm1 = vcmask 130048   ;;  %v257_v19 = vlaneseq  ;;  %s952_s1 = inlined_call_operand.vmem [shape: f32[16,16], index: 1, kind: input, shape index: {}]   ;;  %s953_s0 = inlined_call_operand.vmem [shape: f32[8,16], index: 0, kind: input, shape index: {}]   ;;  %s954_s2 = inlined_call_operand.vmem [shape: f32[16,128], index: 2, kind: input, shape index: {}]   ;;  %s955_s3 = inlined_call_operand.vmem [shape: bf16[128,128], index: 3, kind: input, shape index: {}]   ;;  %s956_s10 = inlined_call_operand.vmem [shape: f32[8,8], index: 10, kind: output, shape index: {2}]   ;;  %s957_s5 = inlined_call_operand.vmem [shape: bf16[128,128], index: 5, kind: input, shape index: {}]   ;;  %s958_s4 = inlined_call_operand.vmem [shape: f32[1,128], index: 4, kind: input, shape index: {}]   ;;  %s959_s6 = inlined_call_operand.vmem [shape: f32[1,128], index: 6, kind: input, shape index: {}]   ;;  %s960_s7 = inlined_call_operand.vmem [shape: f32[1,128], index: 7, kind: input, shape index: {}]   ;;  %s961_s9 = inlined_call_operand.vmem [shape: f32[8,1], index: 9, kind: output, shape index: {1}]   ;;  %s962_s8 = inlined_call_operand.vmem [shape: f32[8,128], index: 8, kind: output, shape index: {0}]  }
   0x1   :  { %673 = vmatprep.subr.mxu0 %v766_v0  ;;  %v35_v1 = vld [vmem:[%s952_s1 + $0x8] sm:$0xff]  ;;  %v34_v2 = vld [vmem:[%s952_s1] sm:$0xff]  ;;  %677 = vmatprep.mubr.msk.f32.mxu0 %vm767_vm0, %v766_v0  ;;  %v746_v6 = vld [vmem:[%s955_s3 + $0x38] sm:$0xff]   ;;  %vm255_vm3 = vcmask 64512   ;;  %vm379_vm4 = vcmask 1043456   ;;  %vm604_vm5 = vcmask 7168  }
   0x2   :  { %674 = vmatpush3.msra.mxu0 %v35_v1  ;;  %v33_v3 = vld [vmem:[%s953_s0] sm:$0xff]  ;;  %680 = vmatprep.subr.mxu1 %v766_v0  ;;  %v37_v4 = vld [vmem:[%s954_s2 + $0x8] sm:$0xff]  ;;  %v747_v9 = vld [vmem:[%s955_s3 + $0x30] sm:$0xff]   ;;  %v258_v20 = vshrl.u32 %v257_v19, 7  ;;  %v260_v21 = vand.u32 127, %v257_v19 }
   0x3   :  { %675 = vmatprep.subr.mxu0 %v766_v0  ;;  %681 = vmatpush3.xpose.msk.msra.mxu1 %vm38_vm1, %v33_v3  ;;  %v36_v5 = vld [vmem:[%s954_s2] sm:$0xff]  ;;  %v748_v11 = vld [vmem:[%s955_s3 + $0x28] sm:$0xff]   ;;  %v750_v14 = vld [vmem:[%s955_s3 + $0x18] sm:$0xff]  }
   0x4   :  { %676 = vmatpush3.msra.mxu0 %v34_v2  ;;  %682 = vmatprep.mubr.msk.f32.mxu1 %vm767_vm0, %v766_v0  ;;  %v749_v13 = vld [vmem:[%s955_s3 + $0x20] sm:$0xff]   ;;  %v751_v15 = vld [vmem:[%s955_s3 + $0x10] sm:$0xff]   ;;  %v752_v16 = vld [vmem:[%s955_s3 + $0x8] sm:$0xff]   ;;  %vm261_vm2 = vcmp.eq.s32.totalorder %v258_v20, %v260_v21 }
   0x5   :  { %678 = vmatmul.mubr.msk.f32.vlgmr.msra.gmra.mxu0 %vm38_vm1, %v33_v3  ;;  %685 = vmatprep.subr.mxu0 %v766_v0  ;;  %v753_v17 = vld [vmem:[%s955_s3] sm:$0xff]   ;;  %v262_v22 = vsel %vm261_vm2, 2.0, %v766_v0  ;;  %v754_v36 = vld [vmem:[%s957_s5 + $0x38] sm:$0xff]   ;;  %v755_v38 = vld [vmem:[%s957_s5 + $0x30] sm:$0xff]  }
   0x6   :  { %686 = vmatpush3.msra.mxu0 %v37_v4  ;;  %689 = vmatprep.mubr.msk.f32.mxu0 %vm767_vm0, %v766_v0  ;;  %v756_v39 = vld [vmem:[%s957_s5 + $0x28] sm:$0xff]   ;;  %v757_v40 = vld [vmem:[%s957_s5 + $0x20] sm:$0xff]   ;;  %v758_v41 = vld [vmem:[%s957_s5 + $0x18] sm:$0xff]  }
   0x7   :  { %687 = vmatprep.subr.mxu0 %v766_v0  ;;  %692 = vmatprep.subr.bf16.mxu1 %v766_v0  ;;  %v759_v42 = vld [vmem:[%s957_s5 + $0x10] sm:$0xff]   ;;  %v760_v43 = vld [vmem:[%s957_s5 + $0x8] sm:$0xff]   ;;  %v761_v44 = vld [vmem:[%s957_s5] sm:$0xff]  }
   0x8   :  { %688 = vmatpush3.msra.mxu0 %v36_v5  ;;  %v631_v46 = vld [vmem:[%s958_s4] ss:$0 sm:$0xff] }
   0x9   :  { %690 = vmatmul.mubr.msk.f32.vlgmr.msra.gmra.mxu0 %vm38_vm1, %v33_v3  ;;  %712 = vmatprep.subr.bf16.mxu0 %v766_v0  ;;  %v641_v61 = vld [vmem:[%s959_s6] ss:$0 sm:$0xff] }
   0xa   :  { %714 = vmatprep.mubr.msk.bf16.mxu0 %vm767_vm0, %v766_v0 }
  0xc5   :  { %v108_v7 = vpop.f32.mrf.mxu0 }
  0xc6   :  { %683 = vmatmul.mubr.msk.f32.vlgmr.msra.gmra.mxu1 %vm38_vm1, %v108_v7 }
  0xc7   :  { %v679_v8 = vpop.f32.mrf.mxu0  ;;  %693 = vmatpush3.bf16.msra.mxu1 %v746_v6  ;;  %708 = vmatprep.mubr.msk.bf16.mxu1 %vm767_vm0, %v766_v0 }
  0xc8   :  { %694 = vmatprep.subr.bf16.mxu1 %v766_v0 }
  0xc9   :  { %v251_v10 = vpop.f32.mrf.mxu0 }
  0xca   :  { %v269_v18 = vpack.c.bf16 %v251_v10, %v251_v10 }
  0xcb   :  { %695 = vmatpush3.bf16.msra.mxu1 %v747_v9  ;;  %v691_v12 = vpop.f32.mrf.mxu0 }
  0xcc   :  { %696 = vmatprep.subr.bf16.mxu1 %v766_v0 }
  0xcf   :  { %697 = vmatpush3.bf16.msra.mxu1 %v748_v11 }
  0xd0   :  { %698 = vmatprep.subr.bf16.mxu1 %v766_v0 }
  0xd3   :  { %699 = vmatpush3.bf16.msra.mxu1 %v749_v13 }
  0xd4   :  { %700 = vmatprep.subr.bf16.mxu1 %v766_v0 }
  0xd7   :  { %701 = vmatpush3.bf16.msra.mxu1 %v750_v14 }
  0xd8   :  { %702 = vmatprep.subr.bf16.mxu1 %v766_v0 }
  0xdb   :  { %703 = vmatpush3.bf16.msra.mxu1 %v751_v15 }
  0xdc   :  { %704 = vmatprep.subr.bf16.mxu1 %v766_v0 }
  0xdf   :  { %705 = vmatpush3.bf16.msra.mxu1 %v752_v16 }
  0xe0   :  { %706 = vmatprep.subr.bf16.mxu1 %v766_v0 }
  0xe3   :  { %707 = vmatpush3.bf16.msra.mxu1 %v753_v17 }
  0xe4   :  { %738 = vmatprep.subr.bf16.mxu1 %v766_v0 }
  0xe6   :  { %709 = vmatmul.mubr.bf16.vlgmr.msra.gmra.mxu1 %v269_v18 }
  0xe7   :  { %740 = vmatprep.mubr.msk.bf16.mxu1 %vm767_vm0, %v766_v0 }
 0x186   :  { %v181_v23 = vpop.f32.mrf.mxu1 }
 0x187   :  { %256 = vst.msk [vmem:[%s956_s10] sm:$0xff] %vm255_vm3, %v181_v23  ;;  %v263_v24 = vadd.f32 %v262_v22, %v181_v23 }
 0x188   :  { %v684_v25 = vpop.f32.mrf.mxu1 }
 0x189   :  { %v264_v26 = vsel %vm255_vm3, %v263_v24, 0.0  ;;  %v268_v37 = vpack.c.bf16 %v263_v24, %v263_v24 }
 0x18a   :  { %265 = vadd.xlane.f32.xlu0 %v264_v26 }
 0x1a6   :  { %v368_v27 = vpop.f32.mrf.mxu1 }
 0x1a8   :  { %v710_v28 = vpop.f32.mrf.mxu1 }
 0x1aa   :  { %v371_v29 = vpop.f32.mrf.mxu1 }
 0x1ac   :  { %v711_v30 = vpop.f32.mrf.mxu1 }
 0x213   :  { %v266_v31 = vpop.xlane.xlu0 %265 }
 0x214   :  { %762 = vrsqrt.f32 %v266_v31 }
 0x221   :  { %v763_v32 = vpop.eup %762 }
 0x222   :  { %v374_v33 = vmul.f32 %v763_v32, %v368_v27 }
 0x224   :  { %v375_v34 = vpack.c.bf16 %v374_v33, %v374_v33 }
 0x226   :  { %v381_v35 = vsel %vm379_vm4, %v375_v34, 0 }
 0x227   :  { %713 = vmatpush3.bf16.msra.mxu0 %v381_v35 }
 0x228   :  { %718 = vmatprep.subr.bf16.mxu0 %v766_v0 }
 0x22a   :  { %715 = vmatmul.mubr.msk.bf16.vlgmr.msra.gmra.mxu0 %vm255_vm3, %v268_v37 }
 0x22b   :  { %719 = vmatpush3.bf16.msra.mxu0 %v754_v36  ;;  %734 = vmatprep.mubr.msk.bf16.mxu0 %vm767_vm0, %v766_v0 }
 0x22c   :  { %720 = vmatprep.subr.bf16.mxu0 %v766_v0 }
 0x22f   :  { %721 = vmatpush3.bf16.msra.mxu0 %v755_v38 }
 0x230   :  { %722 = vmatprep.subr.bf16.mxu0 %v766_v0 }
 0x233   :  { %723 = vmatpush3.bf16.msra.mxu0 %v756_v39 }
 0x234   :  { %724 = vmatprep.subr.bf16.mxu0 %v766_v0 }
 0x237   :  { %725 = vmatpush3.bf16.msra.mxu0 %v757_v40 }
 0x238   :  { %726 = vmatprep.subr.bf16.mxu0 %v766_v0 }
 0x23b   :  { %727 = vmatpush3.bf16.msra.mxu0 %v758_v41 }
 0x23c   :  { %728 = vmatprep.subr.bf16.mxu0 %v766_v0 }
 0x23f   :  { %729 = vmatpush3.bf16.msra.mxu0 %v759_v42 }
 0x240   :  { %730 = vmatprep.subr.bf16.mxu0 %v766_v0 }
 0x243   :  { %731 = vmatpush3.bf16.msra.mxu0 %v760_v43 }
 0x244   :  { %732 = vmatprep.subr.bf16.mxu0 %v766_v0  ;;  %v642_v0 = vld [vmem:[%s960_s7] ss:$0 sm:$0xff] }
 0x247   :  { %733 = vmatpush3.bf16.msra.mxu0 %v761_v44 }
 0x2ea   :  { %v417_v45 = vpop.f32.mrf.mxu0 }
 0x2eb   :  { %v423_v47 = vmul.f32 %v763_v32, %v417_v45 }
 0x2ec   :  { %v716_v48 = vpop.f32.mrf.mxu0 }
 0x2ed   :  { %v431_v49 = vadd.f32 %v631_v46, %v423_v47 }
 0x2ee   :  { %v420_v50 = vpop.f32.mrf.mxu0 }
 0x2ef   :  { %v432_v51 = vpack.c.bf16 %v431_v49, %v431_v49 }
 0x2f0   :  { %v717_v52 = vpop.f32.mrf.mxu0 }
 0x2f1   :  { %735 = vmatmul.mubr.bf16.vlgmr.msra.gmra.mxu0 %v432_v51 }
 0x3b1   :  { %v531_v53 = vpop.f32.mrf.mxu0 }
 0x3b2   :  { %v537_v54 = vmul.f32 %v763_v32, %v531_v53 }
 0x3b3   :  { %v736_v55 = vpop.f32.mrf.mxu0 }
 0x3b4   :  { %v538_v56 = vpack.c.bf16 %v537_v54, %v537_v54 }
 0x3b5   :  { %v534_v57 = vpop.f32.mrf.mxu0 }
 0x3b6   :  { %v540_v58 = vsel %vm379_vm4, %v538_v56, 0 }
 0x3b7   :  { %v737_v59 = vpop.f32.mrf.mxu0  ;;  %739 = vmatpush3.bf16.msra.mxu1 %v540_v58 }
 0x3ba   :  { %741 = vmatmul.mubr.msk.bf16.vlgmr.msra.gmra.mxu1 %vm255_vm3, %v268_v37 }
 0x47a   :  { %v576_v60 = vpop.f32.mrf.mxu1 }
 0x47b   :  { %v582_v62 = vmul.f32 %v763_v32, %v576_v60 }
 0x47c   :  { %v742_v63 = vpop.f32.mrf.mxu1 }
 0x47d   :  { %v590_v1 = vadd.f32 %v641_v61, %v582_v62 }
 0x47e   :  { %v579_v2 = vpop.f32.mrf.mxu1 }
 0x47f   :  { %v598_v3 = vmul.f32 %v642_v0, %v590_v1 }
 0x480   :  { %v743_v4 = vpop.f32.mrf.mxu1 }
 0x481   :  { %599 = vadd.xlane.f32.xlu0 %v598_v3 }
 0x50a   :  { %v600_v5 = vpop.xlane.xlu0 %599 }
 0x50b   :  { %764 = vtanh.f32 %v600_v5 }
 0x518   :  { %v765_v6 = vpop.eup %764 }
 0x519   :  { %v602_v7 = vmul.f32 %v765_v6, %v590_v1  ;;  %605 = vst.msk [vmem:[%s961_s9] sm:$0xff] %vm604_vm5, %v765_v6 }
 0x51b   :  { %603 = vst [vmem:[%s962_s8] sm:$0xff] %v602_v7 }

// kernel: net_forward.3
= control target key start
LH: loop header
LB: loop body
LE: loop exit
PB: predicated region body
PF: predicated region fallthrough
CT: control target
= control target key end

     0   :  { %14 = vsyncpa [#allocation3], 0  ;;  %s1334_s0 = inlined_call_operand.vmem [shape: f32[16,16], index: 0, kind: input, shape index: {}]   ;;  %s1335_s1 = inlined_call_operand.hbm [shape: f32[16,512], index: 1, kind: input, shape index: {}]   ;;  %s1336_s2 = inlined_call_operand.hbm [shape: bf16[512,256], index: 2, kind: input, shape index: {}]   ;;  %s1337_s3 = inlined_call_operand.vmem [shape: f32[1,256], index: 3, kind: input, shape index: {}]   ;;  %s1338_s4 = inlined_call_operand.hbm [shape: bf16[256,128], index: 4, kind: input, shape index: {}]   ;;  %s1339_s5 = inlined_call_operand.vmem [shape: f32[1,128], index: 5, kind: input, shape index: {}]   ;;  %s1340_s6 = inlined_call_operand.vmem [shape: f32[1,128], index: 6, kind: input, shape index: {}]   ;;  %s1341_s7 = inlined_call_operand.vmem [shape: f32[16,128], index: 7, kind: output, shape index: {0}]   ;;  %s1342_s8 = inlined_call_operand.vmem [shape: f32[16,1], index: 8, kind: output, shape index: {1}]  }
   0x1   :  { %15 = vsyncpa [#allocation5], 0  ;;  %s1215_s27 = smov [#allocation4]  }
   0x2   :  { %s35_s28 = sshll.u32 %s1215_s27, 4  ;;  %s36_s28 = int_to_ptr.vmem [resolvable:$true] %s35_s28 }
   0x3   :  { %s1159_s29 = scalar_lea.vmem %s36_s28, 8192  ;;  %p1164_p1 = scmp.lt.s32.totalorder %s36_s28, %s36_s28 }
   0x4   :  { %p1160_p0 = scmp.ne.s32.totalorder %s36_s28, %s1159_s29  ;;  %p1165_p2 = scmp.lt.s32.totalorder %s1159_s29, %s1159_s29 }
   0x6   :  { %p1166_p3 = por %p1165_p2, %p1164_p1 }
   0x8   :  { %p1167_p4 = pnand %p1166_p3, %p1160_p0 }
   0xa   :  { %1170 = shalt.err (!%p1167_p4)
}
   0xb   :  { %s1216_s30 = smov 128   ;;  %s1217_s9 = smov 8  }
   0xc   :  { %41 = dma.hbm_to_vmem [thread:$0]  %s1336_s2, 8192, %s36_s28, [#allocation5], %s1216_s30, %s1216_s30, %s1217_s9  }
   0xd   :  { %s1218_s12 = smov [#allocation2]  }
   0xe   :  { %s23_s13 = sshll.u32 %s1218_s12, 4  ;;  %s24_s13 = int_to_ptr.vmem [resolvable:$true] %s23_s13 }
   0xf   :  { %s1179_s14 = scalar_lea.vmem %s24_s13, 1024  ;;  %p1184_p6 = scmp.lt.s32.totalorder %s24_s13, %s24_s13 }
  0x10   :  { %p1180_p5 = scmp.ne.s32.totalorder %s24_s13, %s1179_s14  ;;  %p1185_p7 = scmp.lt.s32.totalorder %s1179_s14, %s1179_s14 }
  0x12   :  { %p1186_p8 = por %p1185_p7, %p1184_p6 }
  0x14   :  { %p1187_p9 = pnand %p1186_p8, %p1180_p5 }
  0x16   :  { %1190 = shalt.err (!%p1187_p9)
}
  0x17   :  { %s1219_s15 = smov 512   ;;  %s1220_s16 = smov 32  }
  0x18   :  { %29 = dma.hbm_to_vmem [thread:$0]  %s1335_s1, 1024, %s24_s13, [#allocation3], %s1219_s15, %s1219_s15, %s1220_s16  }
  0x19   :  { %s1221_s19 = smov [#allocation6]  }
  0x1a   :  { %s49_s20 = sshll.u32 %s1221_s19, 4  ;;  %s50_s20 = int_to_ptr.vmem [resolvable:$true] %s49_s20 }
  0x1b   :  { %s1199_s2 = scalar_lea.vmem %s50_s20, 2048  ;;  %p1204_p11 = scmp.lt.s32.totalorder %s50_s20, %s50_s20 }
  0x1c   :  { %p1200_p10 = scmp.ne.s32.totalorder %s50_s20, %s1199_s2  ;;  %p1205_p12 = scmp.lt.s32.totalorder %s1199_s2, %s1199_s2 }
  0x1e   :  { %p1206_p13 = por %p1205_p12, %p1204_p11 }
  0x20   :  { %p1207_p0 = pnand %p1206_p13, %p1200_p10 }
  0x22   :  { %1210 = shalt.err (!%p1207_p0)
}
  0x23   :  { %s1222_s21 = smov 64   ;;  %s1223_s22 = smov 4  }
  0x24   :  { %55 = dma.hbm_to_vmem [thread:$0]  %s1338_s4, 2048, %s50_s20, [#allocation5], %s1222_s21, %s1222_s21, %s1223_s22  }
  0x25   :  { %1211 = dma.done.wait [#allocation3], 1024  }
  0x26   :  { %1212 = vsyncadd [#allocation3], 4294966272 }
  0x27   :  { %1213 = dma.done.wait [#allocation5], 10240  }
  0x28   :  { %1214 = vsyncadd [#allocation5], 4294957056  ;;  %v1031_v0 = vld [vmem:[#allocation4 + $0x74] ss:$8 sps:$4 sm:$0xff]   ;;  %v1035_v2 = vld [vmem:[#allocation4 + $0x70] ss:$8 sps:$4 sm:$0xff]   ;;  %v72_v34 = vlaneseq }
  0x29   :  { %v1033_v1 = vld [vmem:[#allocation4 + $0x174] ss:$8 sps:$4 sm:$0xff]   ;;  %489 = vmatprep.subr.bf16.mxu0 %v1031_v0  ;;  %v1036_v3 = vld [vmem:[#allocation4 + $0x170] ss:$8 sps:$4 sm:$0xff]   ;;  %v1037_v4 = vld [vmem:[#allocation4 + $0x64] ss:$8 sps:$4 sm:$0xff]  }
  0x2a   :  { %532 = vmatprep.subr.bf16.mxu1 %v1033_v1  ;;  %490 = vmatpush1.bf16.msra.mxu0 %v1035_v2  ;;  %v1039_v5 = vld [vmem:[#allocation4 + $0x164] ss:$8 sps:$4 sm:$0xff]   ;;  %v1041_v6 = vld [vmem:[#allocation4 + $0x60] ss:$8 sps:$4 sm:$0xff]   ;;  %v1043_v8 = vld [vmem:[#allocation4 + $0x54] ss:$8 sps:$4 sm:$0xff]  }
  0x2b   :  { %533 = vmatpush1.bf16.msra.mxu1 %v1036_v3  ;;  %491 = vmatprep.subr.bf16.mxu0 %v1037_v4  ;;  %v1042_v7 = vld [vmem:[#allocation4 + $0x160] ss:$8 sps:$4 sm:$0xff]   ;;  %v1045_v9 = vld [vmem:[#allocation4 + $0x154] ss:$8 sps:$4 sm:$0xff]   ;;  %v1047_v10 = vld [vmem:[#allocation4 + $0x50] ss:$8 sps:$4 sm:$0xff]  }
  0x2c   :  { %534 = vmatprep.subr.bf16.mxu1 %v1039_v5  ;;  %v1048_v11 = vld [vmem:[#allocation4 + $0x150] ss:$8 sps:$4 sm:$0xff]   ;;  %v1049_v12 = vld [vmem:[#allocation4 + $0x44] ss:$8 sps:$4 sm:$0xff]   ;;  %v1053_v14 = vld [vmem:[#allocation4 + $0x40] ss:$8 sps:$4 sm:$0xff]  }
  0x2d   :  { %v1051_v13 = vld [vmem:[#allocation4 + $0x144] ss:$8 sps:$4 sm:$0xff]   ;;  %v1054_v15 = vld [vmem:[#allocation4 + $0x140] ss:$8 sps:$4 sm:$0xff]   ;;  %v1055_v16 = vld [vmem:[#allocation4 + $0x34] ss:$8 sps:$4 sm:$0xff]  }
  0x2e   :  { %492 = vmatpush1.bf16.msra.mxu0 %v1041_v6  ;;  %v1057_v17 = vld [vmem:[#allocation4 + $0x134] ss:$8 sps:$4 sm:$0xff]   ;;  %v1059_v18 = vld [vmem:[#allocation4 + $0x30] ss:$8 sps:$4 sm:$0xff]   ;;  %v1061_v20 = vld [vmem:[#allocation4 + $0x24] ss:$8 sps:$4 sm:$0xff]  }
  0x2f   :  { %535 = vmatpush1.bf16.msra.mxu1 %v1042_v7  ;;  %493 = vmatprep.subr.bf16.mxu0 %v1043_v8  ;;  %v1060_v19 = vld [vmem:[#allocation4 + $0x130] ss:$8 sps:$4 sm:$0xff]   ;;  %v1063_v21 = vld [vmem:[#allocation4 + $0x124] ss:$8 sps:$4 sm:$0xff]   ;;  %v1065_v22 = vld [vmem:[#allocation4 + $0x20] ss:$8 sps:$4 sm:$0xff]  }
  0x30   :  { %536 = vmatprep.subr.bf16.mxu1 %v1045_v9  ;;  %v1066_v23 = vld [vmem:[#allocation4 + $0x120] ss:$8 sps:$4 sm:$0xff]   ;;  %v1067_v24 = vld [vmem:[#allocation4 + $0x14] ss:$8 sps:$4 sm:$0xff]   ;;  %v1071_v26 = vld [vmem:[#allocation4 + $0x10] ss:$8 sps:$4 sm:$0xff]  }
  0x31   :  { %v1069_v25 = vld [vmem:[#allocation4 + $0x114] ss:$8 sps:$4 sm:$0xff]   ;;  %v1072_v27 = vld [vmem:[#allocation4 + $0x110] ss:$8 sps:$4 sm:$0xff]   ;;  %v1073_v28 = vld [vmem:[#allocation4 + $0x4] ss:$8 sps:$4 sm:$0xff]  }
  0x32   :  { %494 = vmatpush1.bf16.msra.mxu0 %v1047_v10  ;;  %v1075_v29 = vld [vmem:[#allocation4 + $0x104] ss:$8 sps:$4 sm:$0xff]   ;;  %v1077_v30 = vld [vmem:[#allocation4] ss:$8 sps:$4 sm:$0xff]   ;;  %v1079_v32 = vld [vmem:[#allocation4 + $0xf4] ss:$8 sps:$4 sm:$0xff]  }
  0x33   :  { %537 = vmatpush1.bf16.msra.mxu1 %v1048_v11  ;;  %495 = vmatprep.subr.bf16.mxu0 %v1049_v12  ;;  %v1078_v31 = vld [vmem:[#allocation4 + $0x100] ss:$8 sps:$4 sm:$0xff]   ;;  %v1081_v33 = vld [vmem:[#allocation4 + $0x1f4] ss:$8 sps:$4 sm:$0xff]   ;;  %v1083_v35 = vld [vmem:[#allocation4 + $0xf0] ss:$8 sps:$4 sm:$0xff]  }
  0x34   :  { %538 = vmatprep.subr.bf16.mxu1 %v1051_v13  ;;  %v1084_v36 = vld [vmem:[#allocation4 + $0x1f0] ss:$8 sps:$4 sm:$0xff]   ;;  %v1085_v37 = vld [vmem:[#allocation4 + $0xe4] ss:$8 sps:$4 sm:$0xff]   ;;  %v1281_v39 = vshrl.u32 %v72_v34, 7  ;;  %v76_v41 = vand.u32 127, %v72_v34 }
  0x35   :  { %v1087_v38 = vld [vmem:[#allocation4 + $0x1e4] ss:$8 sps:$4 sm:$0xff]   ;;  %v1089_v40 = vld [vmem:[#allocation4 + $0xe0] ss:$8 sps:$4 sm:$0xff]   ;;  %v1091_v43 = vld [vmem:[#allocation4 + $0xd4] ss:$8 sps:$4 sm:$0xff]  }
  0x36   :  { %496 = vmatpush1.bf16.msra.mxu0 %v1053_v14  ;;  %v1090_v42 = vld [vmem:[#allocation4 + $0x1e0] ss:$8 sps:$4 sm:$0xff]   ;;  %v74_v44 = vadd.s32 8, %v1281_v39  ;;  %v1093_v45 = vld [vmem:[#allocation4 + $0x1d4] ss:$8 sps:$4 sm:$0xff]   ;;  %vm77_vm0 = vcmp.eq.s32.totalorder %v1281_v39, %v76_v41  ;;  %v1224_v54 = vmov 0.0  }
  0x37   :  { %539 = vmatpush1.bf16.msra.mxu1 %v1054_v15  ;;  %497 = vmatprep.subr.bf16.mxu0 %v1055_v16  ;;  %v1095_v46 = vld [vmem:[#allocation4 + $0xd0] ss:$8 sps:$4 sm:$0xff]   ;;  %v1097_v48 = vld [vmem:[#allocation4 + $0xc4] ss:$8 sps:$4 sm:$0xff]   ;;  %v79_v55 = vsel %vm77_vm0, 2.0, %v1224_v54  ;;  %vm83_vm2 = vcmask 130048  }
  0x38   :  { %540 = vmatprep.subr.bf16.mxu1 %v1057_v17  ;;  %v1096_v47 = vld [vmem:[#allocation4 + $0x1d0] ss:$8 sps:$4 sm:$0xff]   ;;  %vm78_vm1 = vcmp.eq.s32.totalorder %v74_v44, %v76_v41  ;;  %v1099_v49 = vld [vmem:[#allocation4 + $0x1c4] ss:$8 sps:$4 sm:$0xff]   ;;  %v1101_v57 = vld [vmem:[#allocation4 + $0xc0] ss:$8 sps:$4 sm:$0xff]  }
  0x39   :  { %v94_v50 = vld [vmem:[#allocation2 + $0x8] sm:$0xff]  ;;  %v96_v52 = vld [vmem:[#allocation2 + $0x18] sm:$0xff]  ;;  %v80_v56 = vsel %vm78_vm1, 2.0, %v1224_v54  ;;  %v70_v63 = vld [vmem:[%s1334_s0] sm:$0xff]  ;;  %vm1226_vm3 = vmmov 0   ;;  %vm892_vm4 = vcmask 7168  }
  0x3a   :  { %498 = vmatpush1.bf16.msra.mxu0 %v1059_v18  ;;  %v98_v51 = vld [vmem:[#allocation2 + $0x28] sm:$0xff]  ;;  %v100_v53 = vld [vmem:[#allocation2 + $0x38] sm:$0xff]  ;;  %v81_v3 = vadd.f32 %v79_v55, %v70_v63  ;;  %v1134_v34 = vld [vmem:[#allocation6 + $0x20] sm:$0xff]  }
  0x3b   :  { %541 = vmatpush1.bf16.msra.mxu1 %v1060_v19  ;;  %499 = vmatprep.subr.bf16.mxu0 %v1061_v20  ;;  %v1102_v58 = vld [vmem:[#allocation4 + $0x1c0] ss:$8 sps:$4 sm:$0xff]   ;;  %v1103_v59 = vld [vmem:[#allocation4 + $0xb4] ss:$8 sps:$4 sm:$0xff]   ;;  %v102_v60 = vpack.c.bf16 %v98_v51, %v94_v50  ;;  %v104_v61 = vpack.c.bf16 %v100_v53, %v96_v52  ;;  %v1107_v1 = vld [vmem:[#allocation4 + $0xb0] ss:$8 sps:$4 sm:$0xff]  }
  0x3c   :  { %542 = vmatprep.subr.bf16.mxu1 %v1063_v21  ;;  %v1105_v62 = vld [vmem:[#allocation4 + $0x1b4] ss:$8 sps:$4 sm:$0xff]   ;;  %v71_v0 = vld [vmem:[%s1334_s0 + $0x8] sm:$0xff]  ;;  %v1108_v2 = vld [vmem:[#allocation4 + $0x1b0] ss:$8 sps:$4 sm:$0xff]   ;;  %v84_v7 = vsel %vm83_vm2, %v81_v3, 0.0 }
  0x3d   :  { %521 = vmatprep.mubr.bf16.mxu0 %v102_v60  ;;  %564 = vmatprep.mubr.bf16.mxu1 %v104_v61  ;;  %v82_v4 = vadd.f32 %v80_v56, %v71_v0  ;;  %v1109_v5 = vld [vmem:[#allocation4 + $0xa4] ss:$8 sps:$4 sm:$0xff]   ;;  %v1113_v10 = vld [vmem:[#allocation4 + $0xa0] ss:$8 sps:$4 sm:$0xff]   ;;  %v1115_v12 = vld [vmem:[#allocation4 + $0x94] ss:$8 sps:$4 sm:$0xff]  }
  0x3e   :  { %500 = vmatpush1.bf16.msra.mxu0 %v1065_v22  ;;  %v1111_v6 = vld [vmem:[#allocation4 + $0x1a4] ss:$8 sps:$4 sm:$0xff]   ;;  %v1114_v11 = vld [vmem:[#allocation4 + $0x1a0] ss:$8 sps:$4 sm:$0xff]   ;;  %85 = vadd.xlane.f32.xlu0 %v84_v7  ;;  %v1117_v13 = vld [vmem:[#allocation4 + $0x194] ss:$8 sps:$4 sm:$0xff]  }
  0x3f   :  { %543 = vmatpush1.bf16.msra.mxu1 %v1066_v23  ;;  %501 = vmatprep.subr.bf16.mxu0 %v1067_v24  ;;  %v87_v8 = vsel %vm83_vm2, %v82_v4, 0.0  ;;  %v1295_v9 = vpack.c.bf16 %v82_v4, %v81_v3  ;;  %v1119_v14 = vld [vmem:[#allocation4 + $0x90] ss:$8 sps:$4 sm:$0xff]   ;;  %v1121_v16 = vld [vmem:[#allocation4 + $0x84] ss:$8 sps:$4 sm:$0xff]   ;;  %v639_v4 = vsub.s32 1, %v1281_v39 }
  0x40   :  { %544 = vmatprep.subr.bf16.mxu1 %v1069_v25  ;;  %v1120_v15 = vld [vmem:[#allocation4 + $0x190] ss:$8 sps:$4 sm:$0xff]   ;;  %v1123_v17 = vld [vmem:[#allocation4 + $0x184] ss:$8 sps:$4 sm:$0xff]   ;;  %v1125_v18 = vld [vmem:[#allocation4 + $0x80] ss:$8 sps:$4 sm:$0xff]  }
  0x41   :  { %v1126_v19 = vld [vmem:[#allocation4 + $0x180] ss:$8 sps:$4 sm:$0xff]   ;;  %v95_v22 = vld [vmem:[#allocation2 + $0x10] sm:$0xff] }
  0x42   :  { %502 = vmatpush1.bf16.msra.mxu0 %v1071_v26  ;;  %88 = vadd.xlane.f32.xlu0 %v87_v8  ;;  %v93_v20 = vld [vmem:[#allocation2] sm:$0xff]  ;;  %v99_v23 = vld [vmem:[#allocation2 + $0x30] sm:$0xff]  ;;  %v1225_v26 = vmov 0   ;;  %v1139_v63 = vld [vmem:[#allocation6 + $0x48] sm:$0xff]  }
  0x43   :  { %545 = vmatpush1.bf16.msra.mxu1 %v1072_v27  ;;  %503 = vmatprep.subr.bf16.mxu0 %v1073_v28  ;;  %v97_v21 = vld [vmem:[#allocation2 + $0x20] sm:$0xff]  ;;  %v103_v25 = vpack.c.bf16 %v99_v23, %v95_v22  ;;  %v1127_v27 = vld [vmem:[#allocation6 + $0x78] sm:$0xff]   ;;  %v1137_v61 = vld [vmem:[#allocation6 + $0x50] sm:$0xff]  }
  0x44   :  { %546 = vmatprep.subr.bf16.mxu1 %v1075_v29  ;;  %v101_v24 = vpack.c.bf16 %v97_v21, %v93_v20  ;;  %v1128_v28 = vld [vmem:[#allocation6 + $0x38] sm:$0xff]   ;;  %v1129_v29 = vld [vmem:[#allocation6 + $0x70] sm:$0xff]   ;;  %v1140_v0 = vld [vmem:[#allocation6 + $0x8] sm:$0xff]  }
  0x45   :  { %v631_v7 = vld [vmem:[%s1337_s3] sm:$0x3] }
  0x46   :  { %504 = vmatpush1.bf16.msra.mxu0 %v1077_v30  ;;  %v1130_v30 = vld [vmem:[#allocation6 + $0x30] sm:$0xff]  }
  0x47   :  { %547 = vmatpush1.bf16.msra.mxu1 %v1078_v31  ;;  %505 = vmatprep.subr.bf16.mxu0 %v1079_v32  ;;  %v1131_v31 = vld [vmem:[#allocation6 + $0x68] sm:$0xff]  }
  0x48   :  { %548 = vmatprep.subr.bf16.mxu1 %v1081_v33  ;;  %v1132_v32 = vld [vmem:[#allocation6 + $0x28] sm:$0xff]   ;;  %v1133_v33 = vld [vmem:[#allocation6 + $0x60] sm:$0xff]  }
  0x4a   :  { %506 = vmatpush2.bf16.msra.mxu0 %v1083_v35  ;;  %v1135_v35 = vld [vmem:[#allocation6 + $0x58] sm:$0xff]  }
  0x4b   :  { %549 = vmatpush2.bf16.msra.mxu1 %v1084_v36  ;;  %507 = vmatprep.subr.bf16.mxu0 %v1085_v37  ;;  %v1136_v36 = vld [vmem:[#allocation6 + $0x18] sm:$0xff]  }
  0x4c   :  { %550 = vmatprep.subr.bf16.mxu1 %v1087_v38 }
  0x4e   :  { %508 = vmatpush2.bf16.msra.mxu0 %v1089_v40 }
  0x4f   :  { %551 = vmatpush2.bf16.msra.mxu1 %v1090_v42  ;;  %509 = vmatprep.subr.bf16.mxu0 %v1091_v43 }
  0x50   :  { %552 = vmatprep.subr.bf16.mxu1 %v1093_v45 }
  0x52   :  { %510 = vmatpush2.bf16.msra.mxu0 %v1095_v46 }
  0x53   :  { %553 = vmatpush2.bf16.msra.mxu1 %v1096_v47  ;;  %511 = vmatprep.subr.bf16.mxu0 %v1097_v48 }
  0x54   :  { %554 = vmatprep.subr.bf16.mxu1 %v1099_v49 }
  0x56   :  { %512 = vmatpush2.bf16.msra.mxu0 %v1101_v57 }
  0x57   :  { %555 = vmatpush2.bf16.msra.mxu1 %v1102_v58  ;;  %513 = vmatprep.subr.bf16.mxu0 %v1103_v59 }
  0x58   :  { %556 = vmatprep.subr.bf16.mxu1 %v1105_v62  ;;  %v1138_v62 = vld [vmem:[#allocation6 + $0x10] sm:$0xff]  }
  0x5a   :  { %514 = vmatpush2.bf16.msra.mxu0 %v1107_v1  ;;  %v1141_v1 = vld [vmem:[#allocation6 + $0x40] sm:$0xff]  }
  0x5b   :  { %557 = vmatpush2.bf16.msra.mxu1 %v1108_v2  ;;  %515 = vmatprep.subr.bf16.mxu0 %v1109_v5  ;;  %v1142_v2 = vld [vmem:[#allocation6] sm:$0xff]   ;;  %v635_v5 = vsub.s32 0, %v1281_v39 }
  0x5c   :  { %558 = vmatprep.subr.bf16.mxu1 %v1111_v6 }
  0x5e   :  { %516 = vmatpush2.bf16.msra.mxu0 %v1113_v10 }
  0x5f   :  { %559 = vmatpush2.bf16.msra.mxu1 %v1114_v11  ;;  %517 = vmatprep.subr.bf16.mxu0 %v1115_v12  ;;  %v640_v11 = vrot.slane %v631_v7, %v639_v4 }
  0x60   :  { %560 = vmatprep.subr.bf16.mxu1 %v1117_v13 }
  0x62   :  { %518 = vmatpush2.bf16.msra.mxu0 %v1119_v14  ;;  %v636_v14 = vrot.slane %v631_v7, %v635_v5 }
  0x63   :  { %561 = vmatpush2.bf16.msra.mxu1 %v1120_v15  ;;  %519 = vmatprep.subr.bf16.mxu0 %v1121_v16 }
  0x64   :  { %562 = vmatprep.subr.bf16.mxu1 %v1123_v17 }
  0x66   :  { %520 = vmatpush2.bf16.msra.mxu0 %v1125_v18 }
  0x67   :  { %563 = vmatpush2.bf16.msra.mxu1 %v1126_v19 }
  0x68   :  { %989 = vmatprep.subr.bf16.mxu1 %v1127_v27 }
  0x69   :  { %522 = vmatmul.mubr.bf16.vlgmr.msra.gmra.mxu0 %v101_v24 }
  0x6a   :  { %565 = vmatmul.mubr.bf16.vlgmr.msra.gmra.mxu1 %v103_v25  ;;  %616 = vmatprep.mubr.bf16.mxu0 %v1225_v26 }
  0x6b   :  { %990 = vmatpush3.bf16.msra.mxu1 %v1128_v28 }
  0x6c   :  { %991 = vmatprep.subr.bf16.mxu1 %v1129_v29 }
  0x6f   :  { %992 = vmatpush3.bf16.msra.mxu1 %v1130_v30 }
  0x70   :  { %993 = vmatprep.subr.bf16.mxu1 %v1131_v31 }
  0x73   :  { %994 = vmatpush3.bf16.msra.mxu1 %v1132_v32  ;;  %v987_v32 = vld [vmem:[%s1339_s5] ss:$0 sm:$0xff] }
  0x74   :  { %995 = vmatprep.subr.bf16.mxu1 %v1133_v33 }
  0x77   :  { %996 = vmatpush3.bf16.msra.mxu1 %v1134_v34  ;;  %v988_v34 = vld [vmem:[%s1340_s6] ss:$0 sm:$0xff] }
  0x78   :  { %997 = vmatprep.subr.bf16.mxu1 %v1135_v35 }
  0x7b   :  { %998 = vmatpush3.bf16.msra.mxu1 %v1136_v36 }
  0x7c   :  { %999 = vmatprep.subr.bf16.mxu1 %v1137_v61 }
  0x7f   :  { %1000 = vmatpush3.bf16.msra.mxu1 %v1138_v62 }
  0x80   :  { %1001 = vmatprep.subr.bf16.mxu1 %v1139_v63 }
  0x83   :  { %1002 = vmatpush3.bf16.msra.mxu1 %v1140_v0 }
  0x84   :  { %1003 = vmatprep.subr.bf16.mxu1 %v1141_v1 }
  0x87   :  { %1004 = vmatpush3.bf16.msra.mxu1 %v1142_v2 }
  0xc7   :  { %v86_v37 = vpop.xlane.xlu0 %85 }
  0xcb   :  { %v89_v38 = vpop.xlane.xlu0 %88 }
  0xcc   :  { %1143 = vrsqrt.f32 %v89_v38 }
  0xcd   :  { %1145 = vrsqrt.f32 %v86_v37 }
  0xd9   :  { %v1297_v46 = vpop.eup %1143 }
  0xda   :  { %v1146_v52 = vpop.eup %1145 }
 0x129   :  { %v523_v40 = vpop.f32.mrf.mxu0 }
 0x12a   :  { %v566_v41 = vpop.f32.mrf.mxu1 }
 0x12b   :  { %v525_v42 = vpop.f32.mrf.mxu0  ;;  %v567_v49 = vadd.f32 %v566_v41, %v523_v40 }
 0x12c   :  { %v568_v43 = vpop.f32.mrf.mxu1 }
 0x12d   :  { %v527_v44 = vpop.f32.mrf.mxu0  ;;  %v569_v47 = vadd.f32 %v568_v43, %v525_v42  ;;  %v575_v58 = vmul.f32 %v1146_v52, %v567_v49 }
 0x12e   :  { %v570_v45 = vpop.f32.mrf.mxu1 }
 0x12f   :  { %v571_v48 = vadd.f32 %v570_v45, %v527_v44  ;;  %v529_v50 = vpop.f32.mrf.mxu0  ;;  %v576_v56 = vmul.f32 %v1146_v52, %v569_v47 }
 0x130   :  { %v572_v51 = vpop.f32.mrf.mxu1 }
 0x131   :  { %v573_v53 = vadd.f32 %v572_v51, %v529_v50  ;;  %v577_v55 = vmul.f32 %v1297_v46, %v571_v48 }
 0x133   :  { %v578_v57 = vmul.f32 %v1297_v46, %v573_v53  ;;  %v579_v60 = vpack.c.bf16 %v577_v55, %v575_v58 }
 0x135   :  { %v580_v59 = vpack.c.bf16 %v578_v57, %v576_v56 }
 0x137   :  { %598 = vmatprep.subr.bf16.mxu0 %v580_v59 }
 0x138   :  { %599 = vmatpush1.bf16.msra.mxu0 %v579_v60 }
 0x139   :  { %1013 = vmatprep.subr.bf16.mxu0 %v1224_v54 }
 0x13b   :  { %969 = vmatmul.mubr.msk.bf16.vlgmr.msra.gmra.mxu0 %vm83_vm2, %v1295_v9 }
 0x13c   :  { %1015 = vmatprep.mubr.msk.bf16.mxu0 %vm1226_vm3, %v1224_v54 }
 0x1fb   :  { %v618_v3 = vpop.f32.mrf.mxu0 }
 0x1fc   :  { %v627_v13 = vmul.f32 %v1146_v52, %v618_v3 }
 0x1fd   :  { %v620_v6 = vpop.f32.mrf.mxu0 }
 0x1fe   :  { %v628_v10 = vmul.f32 %v1146_v52, %v620_v6  ;;  %v643_v20 = vadd.f32 %v636_v14, %v627_v13 }
 0x1ff   :  { %v622_v8 = vpop.f32.mrf.mxu0 }
 0x200   :  { %v629_v12 = vmul.f32 %v1297_v46, %v622_v8  ;;  %v644_v18 = vadd.f32 %v640_v11, %v628_v10 }
 0x201   :  { %v624_v15 = vpop.f32.mrf.mxu0 }
 0x202   :  { %v630_v16 = vmul.f32 %v1297_v46, %v624_v15  ;;  %v645_v17 = vadd.f32 %v636_v14, %v629_v12 }
 0x204   :  { %v646_v19 = vadd.f32 %v640_v11, %v630_v16  ;;  %v647_v21 = vpack.c.bf16 %v645_v17, %v643_v20 }
 0x206   :  { %v648_v39 = vpack.c.bf16 %v646_v19, %v644_v18 }
 0x208   :  { %809 = vmatprep.mubr.bf16.mxu1 %v648_v39 }
 0x209   :  { %810 = vmatmul.mubr.bf16.vlgmr.msra.gmra.mxu1 %v647_v21 }
 0x2c9   :  { %v1005_v22 = vpop.f32.mrf.mxu1 }
 0x2cb   :  { %v1006_v23 = vpop.f32.mrf.mxu1 }
 0x2cc   :  { %v1007_v25 = vadd.f32 %v1006_v23, %v1005_v22 }
 0x2cd   :  { %v1008_v24 = vpop.f32.mrf.mxu1 }
 0x2ce   :  { %v818_v28 = vmul.f32 %v1146_v52, %v1007_v25 }
 0x2cf   :  { %v1009_v26 = vpop.f32.mrf.mxu1 }
 0x2d0   :  { %v1010_v27 = vadd.f32 %v1009_v26, %v1008_v24 }
 0x2d2   :  { %v819_v29 = vmul.f32 %v1297_v46, %v1010_v27 }
 0x2d4   :  { %v820_v30 = vpack.c.bf16 %v819_v29, %v818_v28 }
 0x2d6   :  { %1014 = vmatpush3.bf16.msra.mxu0 %v820_v30 }
 0x2d9   :  { %1016 = vmatmul.mubr.msk.bf16.vlgmr.msra.gmra.mxu0 %vm83_vm2, %v1295_v9 }
 0x399   :  { %v855_v31 = vpop.f32.mrf.mxu0 }
 0x39a   :  { %v862_v54 = vmul.f32 %v1146_v52, %v855_v31 }
 0x39b   :  { %v1017_v33 = vpop.f32.mrf.mxu0 }
 0x39c   :  { %v871_v35 = vadd.f32 %v987_v32, %v862_v54 }
 0x39d   :  { %v858_v36 = vpop.f32.mrf.mxu0 }
 0x39e   :  { %v863_v37 = vmul.f32 %v1297_v46, %v858_v36  ;;  %v880_v38 = vmul.f32 %v988_v34, %v871_v35 }
 0x39f   :  { %v1018_v40 = vpop.f32.mrf.mxu0 }
 0x3a0   :  { %v872_v41 = vadd.f32 %v987_v32, %v863_v37  ;;  %882 = vadd.xlane.f32.xlu1 %v880_v38 }
 0x3a2   :  { %v881_v9 = vmul.f32 %v988_v34, %v872_v41 }
 0x3a4   :  { %884 = vadd.xlane.f32.xlu1 %v881_v9 }
 0x429   :  { %v883_v42 = vpop.xlane.xlu1 %882 }
 0x42a   :  { %1147 = vtanh.f32 %v883_v42 }
 0x42d   :  { %v885_v43 = vpop.xlane.xlu1 %884 }
 0x42e   :  { %1149 = vtanh.f32 %v885_v43 }
 0x437   :  { %v1148_v44 = vpop.eup %1147 }
 0x438   :  { %v888_v45 = vmul.f32 %v1148_v44, %v871_v35  ;;  %893 = vst.msk [vmem:[%s1342_s8] sm:$0xff] %vm892_vm4, %v1148_v44 }
 0x43a   :  { %890 = vst [vmem:[%s1341_s7] sm:$0xff] %v888_v45 }
 0x43b   :  { %v1150_v46 = vpop.eup %1149 }
 0x43c   :  { %v889_v47 = vmul.f32 %v1150_v46, %v872_v41  ;;  %894 = vst.msk [vmem:[%s1342_s8 + $0x8] sm:$0xff] %vm892_vm4, %v1150_v46 }
 0x43e   :  { %891 = vst [vmem:[%s1341_s7 + $0x8] sm:$0xff] %v889_v47 }
 0x43f   :  { %903 = vsyncpa [#allocation3], 1 }
 0x440   :  { %904 = vsyncpa [#allocation5], 1 }

// kernel: net_forward.5
= control target key start
LH: loop header
LB: loop body
LE: loop exit
PB: predicated region body
PF: predicated region fallthrough
CT: control target
= control target key end

     0   :  { %vm52_vm0 = vcmask 64512   ;;  %v1242_v2 = vmov 0.0   ;;  %vm1243_vm1 = vmmov 0   ;;  %s1526_s0 = inlined_call_operand.vmem [shape: f32[4,8], index: 0, kind: input, shape index: {}]   ;;  %s1527_s1 = inlined_call_operand.vmem [shape: f32[8,8], index: 1, kind: input, shape index: {}]   ;;  %s1528_s2 = inlined_call_operand.vmem [shape: f32[8,128], index: 2, kind: input, shape index: {}]   ;;  %s1529_s3 = inlined_call_operand.vmem [shape: f32[2,4], index: 3, kind: input, shape index: {}]   ;;  %s1530_s4 = inlined_call_operand.vmem [shape: bf16[128,128], index: 4, kind: input, shape index: {}]   ;;  %s1531_s5 = inlined_call_operand.vmem [shape: f32[1,128], index: 5, kind: input, shape index: {}]   ;;  %s1532_s6 = inlined_call_operand.vmem [shape: bf16[128,128], index: 6, kind: input, shape index: {}]   ;;  %s1533_s7 = inlined_call_operand.vmem [shape: f32[1,128], index: 7, kind: input, shape index: {}]   ;;  %s1534_s8 = inlined_call_operand.vmem [shape: bf16[128,128], index: 8, kind: input, shape index: {}]   ;;  %s1535_s9 = inlined_call_operand.vmem [shape: f32[1,128], index: 9, kind: input, shape index: {}]   ;;  %s1536_s10 = inlined_call_operand.vmem [shape: bf16[128,64], index: 10, kind: input, shape index: {}]   ;;  %s1537_s11 = inlined_call_operand.vmem [shape: f32[1,64], index: 11, kind: input, shape index: {}]   ;;  %s1538_s12 = inlined_call_operand.vmem [shape: bf16[64,128], index: 12, kind: input, shape index: {}]   ;;  %s1539_s13 = inlined_call_operand.vmem [shape: f32[1,128], index: 13, kind: input, shape index: {}]   ;;  %s1540_s14 = inlined_call_operand.hbm [shape: f32[2,128], index: 14, kind: output, shape index: {}]  }
   0x1   :  { %v50_v0 = vld [vmem:[%s1527_s1] sm:$0xff]  ;;  %1061 = vmatprep.subr.mxu0 %v1242_v2  ;;  %1063 = vmatprep.mubr.msk.f32.mxu0 %vm1243_vm1, %v1242_v2 }
   0x2   :  { %v49_v1 = vld [vmem:[%s1526_s0] sm:$0xf]  ;;  %1062 = vmatpush3.msra.mxu0 %v50_v0  ;;  %1066 = vmatprep.subr.mxu1 %v1242_v2 }
   0x3   :  { %v51_v3 = vld [vmem:[%s1528_s2] sm:$0xff]  ;;  %1064 = vmatmul.mubr.msk.f32.vlgmr.msra.gmra.mxu0 %vm52_vm0, %v49_v1  ;;  %1068 = vmatprep.mubr.msk.f32.mxu1 %vm1243_vm1, %v1242_v2 }
   0x4   :  { %1067 = vmatpush3.msra.mxu1 %v51_v3  ;;  %1071 = vmatprep.subr.mxu0 %v1242_v2 }
   0x5   :  { %1069 = vmatmul.mubr.msk.f32.vlgmr.msra.gmra.mxu1 %vm52_vm0, %v49_v1  ;;  %1072 = vmatpush3.xpose.msk.msra.mxu0 %vm52_vm0, %v49_v1 }
   0x6   :  { %1073 = vmatprep.mubr.msk.f32.mxu0 %vm1243_vm1, %v1242_v2  ;;  %1076 = vmatprep.subr.bf16.mxu1 %v1242_v2 }
   0x7   :  { %1092 = vmatprep.mubr.msk.bf16.mxu1 %vm1243_vm1, %v1242_v2  ;;  %1096 = vmatprep.subr.bf16.mxu0 %v1242_v2 }
   0x8   :  { %19 = vsyncpa [#allocation3], 0  ;;  %v1182_v4 = vld [vmem:[%s1530_s4 + $0x38] sm:$0xff]   ;;  %v1183_v5 = vld [vmem:[%s1530_s4 + $0x30] sm:$0xff]   ;;  %v196_v17 = vlaneseq  ;;  %vm275_vm3 = vcmask 27648   ;;  %vm392_vm4 = vcmask 1041408  }
   0x9   :  { %1077 = vmatpush3.bf16.msra.mxu1 %v1182_v4  ;;  %v1184_v6 = vld [vmem:[%s1530_s4 + $0x28] sm:$0xff]   ;;  %v1185_v7 = vld [vmem:[%s1530_s4 + $0x20] sm:$0xff]   ;;  %v1186_v8 = vld [vmem:[%s1530_s4 + $0x18] sm:$0xff]   ;;  %vm388_vm5 = vcmask 31744   ;;  %vm449_vm6 = vcmask 1043456   ;;  %vm902_vm7 = vcmask 523264  }
   0xa   :  { %1078 = vmatprep.subr.bf16.mxu1 %v1242_v2  ;;  %v1187_v9 = vld [vmem:[%s1530_s4 + $0x10] sm:$0xff]   ;;  %v1188_v10 = vld [vmem:[%s1530_s4 + $0x8] sm:$0xff]   ;;  %v1189_v11 = vld [vmem:[%s1530_s4] sm:$0xff]   ;;  %v197_v18 = vshrl.u32 %v196_v17, 7  ;;  %v199_v19 = vand.u32 127, %v196_v17  ;;  %s1244_s28 = smov [#allocation2]  }
   0xb   :  { %v974_v36 = vld [vmem:[%s1531_s5] ss:$0 sm:$0xff]  ;;  %v1190_v41 = vld [vmem:[%s1532_s6 + $0x38] sm:$0xff]   ;;  %v1191_v44 = vld [vmem:[%s1532_s6 + $0x30] sm:$0xff]  }
   0xc   :  { %vm200_vm2 = vcmp.eq.s32.totalorder %v197_v18, %v199_v19  ;;  %v445_v40 = vld [vmem:[%s1529_s3] sm:$0x3]  ;;  %v1192_v45 = vld [vmem:[%s1532_s6 + $0x28] sm:$0xff]   ;;  %v1194_v47 = vld [vmem:[%s1532_s6 + $0x18] sm:$0xff]  }
   0xd   :  { %1079 = vmatpush3.bf16.msra.mxu1 %v1183_v5  ;;  %v201_v20 = vsel %vm200_vm2, 2.0, %v1242_v2  ;;  %v1193_v46 = vld [vmem:[%s1532_s6 + $0x20] sm:$0xff]   ;;  %v1195_v48 = vld [vmem:[%s1532_s6 + $0x10] sm:$0xff]   ;;  %v1196_v49 = vld [vmem:[%s1532_s6 + $0x8] sm:$0xff]  }
   0xe   :  { %1080 = vmatprep.subr.bf16.mxu1 %v1242_v2  ;;  %v1197_v50 = vld [vmem:[%s1532_s6] sm:$0xff]   ;;  %v1198_v51 = vld [vmem:[%s1534_s8 + $0x38] sm:$0xff]   ;;  %v1199_v52 = vld [vmem:[%s1534_s8 + $0x30] sm:$0xff]  }
   0xf   :  { %v1200_v53 = vld [vmem:[%s1534_s8 + $0x28] sm:$0xff]   ;;  %v1201_v54 = vld [vmem:[%s1534_s8 + $0x20] sm:$0xff]   ;;  %v1202_v55 = vld [vmem:[%s1534_s8 + $0x18] sm:$0xff]  }
  0x10   :  { %v1203_v56 = vld [vmem:[%s1534_s8 + $0x10] sm:$0xff]   ;;  %v1204_v60 = vld [vmem:[%s1534_s8 + $0x8] sm:$0xff]   ;;  %v1205_v61 = vld [vmem:[%s1534_s8] sm:$0xff]  }
  0x11   :  { %1081 = vmatpush3.bf16.msra.mxu1 %v1184_v6  ;;  %v1206_v62 = vld [vmem:[%s1536_s10 + $0x38] sm:$0xff]   ;;  %v1207_v63 = vld [vmem:[%s1536_s10 + $0x30] sm:$0xff]   ;;  %v1208_v0 = vld [vmem:[%s1536_s10 + $0x28] sm:$0xff]  }
  0x12   :  { %1082 = vmatprep.subr.bf16.mxu1 %v1242_v2  ;;  %v1209_v1 = vld [vmem:[%s1536_s10 + $0x20] sm:$0xff]   ;;  %v1210_v3 = vld [vmem:[%s1536_s10 + $0x18] sm:$0xff]   ;;  %v1211_v4 = vld [vmem:[%s1536_s10 + $0x10] sm:$0xff]  }
  0x13   :  { %v977_v5 = vld [vmem:[%s1533_s7] ss:$0 sm:$0xff] }
  0x14   :  { %v986_v17 = vld [vmem:[%s1535_s9] ss:$0 sm:$0xff] }
  0x15   :  { %1083 = vmatpush3.bf16.msra.mxu1 %v1185_v7 }
  0x16   :  { %1084 = vmatprep.subr.bf16.mxu1 %v1242_v2 }
  0x19   :  { %1085 = vmatpush3.bf16.msra.mxu1 %v1186_v8 }
  0x1a   :  { %1086 = vmatprep.subr.bf16.mxu1 %v1242_v2 }
  0x1d   :  { %1087 = vmatpush3.bf16.msra.mxu1 %v1187_v9 }
  0x1e   :  { %1088 = vmatprep.subr.bf16.mxu1 %v1242_v2 }
  0x21   :  { %1089 = vmatpush3.bf16.msra.mxu1 %v1188_v10 }
  0x22   :  { %1090 = vmatprep.subr.bf16.mxu1 %v1242_v2 }
  0x25   :  { %1091 = vmatpush3.bf16.msra.mxu1 %v1189_v11 }
  0x26   :  { %1127 = vmatprep.subr.bf16.mxu1 %v1242_v2 }
  0xc3   :  { %v122_v12 = vpop.f32.mrf.mxu0 }
  0xc4   :  { %1074 = vmatmul.mubr.msk.f32.vlgmr.msra.gmra.mxu0 %vm52_vm0, %v122_v12 }
  0xc5   :  { %v1065_v13 = vpop.f32.mrf.mxu0  ;;  %v192_v14 = vpop.f32.mrf.mxu1  ;;  %1098 = vmatprep.mubr.msk.bf16.mxu0 %vm1243_vm1, %v1242_v2 }
  0xc6   :  { %v281_v15 = vpack.c.bf16 %v192_v14, %v192_v14  ;;  %v1212_v13 = vld [vmem:[%s1536_s10 + $0x8] sm:$0xff]   ;;  %v1213_v14 = vld [vmem:[%s1536_s10] sm:$0xff]  }
  0xc7   :  { %v1070_v16 = vpop.f32.mrf.mxu1 }
  0xc8   :  { %1093 = vmatmul.mubr.bf16.vlgmr.msra.gmra.mxu1 %v281_v15  ;;  %v1214_v15 = vld [vmem:[%s1538_s12 + $0x18] sm:$0xff]   ;;  %v1215_v16 = vld [vmem:[%s1538_s12 + $0x10] sm:$0xff]  }
  0xc9   :  { %1143 = vmatprep.mubr.msk.bf16.mxu1 %vm1243_vm1, %v1242_v2  ;;  %1128 = vmatpush3.bf16.msra.mxu1 %v1198_v51 }
  0xca   :  { %1129 = vmatprep.subr.bf16.mxu1 %v1242_v2 }
  0xcd   :  { %1130 = vmatpush3.bf16.msra.mxu1 %v1199_v52 }
  0xce   :  { %1131 = vmatprep.subr.bf16.mxu1 %v1242_v2 }
  0xd1   :  { %1132 = vmatpush3.bf16.msra.mxu1 %v1200_v53 }
  0xd2   :  { %1133 = vmatprep.subr.bf16.mxu1 %v1242_v2 }
  0xd5   :  { %1134 = vmatpush3.bf16.msra.mxu1 %v1201_v54 }
  0xd6   :  { %1135 = vmatprep.subr.bf16.mxu1 %v1242_v2 }
  0xd9   :  { %1136 = vmatpush3.bf16.msra.mxu1 %v1202_v55 }
  0xda   :  { %1137 = vmatprep.subr.bf16.mxu1 %v1242_v2 }
  0xdd   :  { %1138 = vmatpush3.bf16.msra.mxu1 %v1203_v56 }
  0xde   :  { %1139 = vmatprep.subr.bf16.mxu1 %v1242_v2 }
  0xe1   :  { %1140 = vmatpush3.bf16.msra.mxu1 %v1204_v60 }
  0xe2   :  { %1141 = vmatprep.subr.bf16.mxu1 %v1242_v2 }
  0xe5   :  { %1142 = vmatpush3.bf16.msra.mxu1 %v1205_v61 }
  0xe6   :  { %1167 = vmatprep.subr.bf16.mxu1 %v1242_v2 }
 0x184   :  { %v271_v21 = vpop.f32.mrf.mxu0 }
 0x185   :  { %v272_v22 = vadd.f32 %v271_v21, %v201_v20 }
 0x186   :  { %v1075_v23 = vpop.f32.mrf.mxu0 }
 0x187   :  { %v276_v24 = vsel %vm275_vm3, %v272_v22, 0.0  ;;  %v280_v34 = vpack.c.bf16 %v272_v22, %v272_v22 }
 0x188   :  { %277 = vadd.xlane.f32.xlu0 %v276_v24  ;;  %v380_v25 = vpop.f32.mrf.mxu1 }
 0x18a   :  { %v1094_v26 = vpop.f32.mrf.mxu1 }
 0x18b   :  { %v1217_v26 = vld [vmem:[%s1538_s12] sm:$0xff]  }
 0x18c   :  { %v383_v27 = vpop.f32.mrf.mxu1 }
 0x18d   :  { %v995_v27 = vld [vmem:[%s1537_s11] ss:$0 sm:$0xff] }
 0x18e   :  { %v1095_v28 = vpop.f32.mrf.mxu1 }
 0x211   :  { %v278_v29 = vpop.xlane.xlu0 %277 }
 0x212   :  { %1218 = vrsqrt.f32 %v278_v29 }
 0x21f   :  { %v1219_v30 = vpop.eup %1218 }
 0x220   :  { %v386_v31 = vmul.f32 %v1219_v30, %v380_v25  ;;  %v1216_v25 = vld [vmem:[%s1538_s12 + $0x8] sm:$0xff]   ;;  %s953_s12 = sshll.u32 %s1244_s28, 4  ;;  %s954_s12 = int_to_ptr.vmem [resolvable:$true] %s953_s12 }
 0x221   :  { %s1220_s11 = scalar_lea.vmem %s954_s12, 32  ;;  %p1225_p1 = scmp.lt.s32.totalorder %s954_s12, %s954_s12 }
 0x222   :  { %v387_v32 = vpack.c.bf16 %v386_v31, %v386_v31  ;;  %p1221_p0 = scmp.ne.s32.totalorder %s954_s12, %s1220_s11  ;;  %p1226_p2 = scmp.lt.s32.totalorder %s1220_s11, %s1220_s11 }
 0x224   :  { %v394_v33 = vsel %vm392_vm4, %v387_v32, 0  ;;  %p1227_p3 = por %p1226_p2, %p1225_p1 }
 0x225   :  { %1097 = vmatpush3.bf16.msra.mxu0 %v394_v33 }
 0x226   :  { %1102 = vmatprep.subr.mxu0 %v1242_v2  ;;  %p1228_p4 = pnand %p1227_p3, %p1221_p0 }
 0x228   :  { %1099 = vmatmul.mubr.msk.bf16.vlgmr.msra.gmra.mxu0 %vm388_vm5, %v280_v34 }
 0x229   :  { %1104 = vmatprep.mubr.msk.f32.mxu0 %vm1243_vm1, %v1242_v2 }
 0x2e8   :  { %v430_v35 = vpop.f32.mrf.mxu0 }
 0x2e9   :  { %v436_v37 = vmul.f32 %v1219_v30, %v430_v35 }
 0x2ea   :  { %v1100_v38 = vpop.f32.mrf.mxu0 }
 0x2eb   :  { %v444_v39 = vadd.f32 %v974_v36, %v436_v37 }
 0x2ec   :  { %v433_v42 = vpop.f32.mrf.mxu0 }
 0x2ed   :  { %1103 = vmatpush3.msk.msra.mxu0 %vm449_vm6, %v444_v39 }
 0x2ee   :  { %v1101_v43 = vpop.f32.mrf.mxu0  ;;  %1105 = vmatmul.mubr.msk.f32.vlgmr.msra.gmra.mxu0 %vm388_vm5, %v445_v40  ;;  %1107 = vmatprep.subr.bf16.mxu0 %v1242_v2 }
 0x2ef   :  { %1108 = vmatpush3.bf16.msra.mxu0 %v1190_v41  ;;  %1123 = vmatprep.mubr.msk.bf16.mxu0 %vm1243_vm1, %v1242_v2 }
 0x2f0   :  { %1109 = vmatprep.subr.bf16.mxu0 %v1242_v2 }
 0x2f3   :  { %1110 = vmatpush3.bf16.msra.mxu0 %v1191_v44 }
 0x2f4   :  { %1111 = vmatprep.subr.bf16.mxu0 %v1242_v2 }
 0x2f7   :  { %1112 = vmatpush3.bf16.msra.mxu0 %v1192_v45 }
 0x2f8   :  { %1113 = vmatprep.subr.bf16.mxu0 %v1242_v2 }
 0x2fb   :  { %1114 = vmatpush3.bf16.msra.mxu0 %v1193_v46 }
 0x2fc   :  { %1115 = vmatprep.subr.bf16.mxu0 %v1242_v2 }
 0x2ff   :  { %1116 = vmatpush3.bf16.msra.mxu0 %v1194_v47 }
 0x300   :  { %1117 = vmatprep.subr.bf16.mxu0 %v1242_v2 }
 0x303   :  { %1118 = vmatpush3.bf16.msra.mxu0 %v1195_v48 }
 0x304   :  { %1119 = vmatprep.subr.bf16.mxu0 %v1242_v2 }
 0x307   :  { %1120 = vmatpush3.bf16.msra.mxu0 %v1196_v49 }
 0x308   :  { %1121 = vmatprep.subr.bf16.mxu0 %v1242_v2 }
 0x30b   :  { %1122 = vmatpush3.bf16.msra.mxu0 %v1197_v50 }
 0x30c   :  { %1147 = vmatprep.subr.bf16.mxu0 %v1242_v2 }
 0x3ae   :  { %v519_v57 = vpop.f32.mrf.mxu0 }
 0x3af   :  { %v523_v58 = vpack.c.bf16 %v519_v57, %v519_v57 }
 0x3b0   :  { %v1106_v59 = vpop.f32.mrf.mxu0 }
 0x3b1   :  { %1124 = vmatmul.mubr.bf16.vlgmr.msra.gmra.mxu0 %v523_v58 }
 0x3b2   :  { %1163 = vmatprep.mubr.msk.bf16.mxu0 %vm1243_vm1, %v1242_v2  ;;  %1148 = vmatpush3.bf16.msra.mxu0 %v1206_v62 }
 0x3b3   :  { %1149 = vmatprep.subr.bf16.mxu0 %v1242_v2 }
 0x3b6   :  { %1150 = vmatpush3.bf16.msra.mxu0 %v1207_v63 }
 0x3b7   :  { %1151 = vmatprep.subr.bf16.mxu0 %v1242_v2 }
 0x3ba   :  { %1152 = vmatpush3.bf16.msra.mxu0 %v1208_v0 }
 0x3bb   :  { %1153 = vmatprep.subr.bf16.mxu0 %v1242_v2 }
 0x3be   :  { %1154 = vmatpush3.bf16.msra.mxu0 %v1209_v1 }
 0x3bf   :  { %1155 = vmatprep.subr.bf16.mxu0 %v1242_v2 }
 0x3c2   :  { %1156 = vmatpush3.bf16.msra.mxu0 %v1210_v3 }
 0x3c3   :  { %1157 = vmatprep.subr.bf16.mxu0 %v1242_v2 }
 0x3c6   :  { %1158 = vmatpush3.bf16.msra.mxu0 %v1211_v4 }
 0x3c7   :  { %1159 = vmatprep.subr.bf16.mxu0 %v1242_v2 }
 0x3ca   :  { %1160 = vmatpush3.bf16.msra.mxu0 %v1212_v13 }
 0x3cb   :  { %1161 = vmatprep.subr.bf16.mxu0 %v1242_v2 }
 0x3ce   :  { %1162 = vmatpush3.bf16.msra.mxu0 %v1213_v14 }
 0x471   :  { %v629_v6 = vpop.f32.mrf.mxu0 }
 0x472   :  { %v630_v7 = vadd.f32 %v977_v5, %v629_v6 }
 0x473   :  { %v1125_v8 = vpop.f32.mrf.mxu0 }
 0x474   :  { %v635_v9 = vmax.f32 %v630_v7, 0.0 }
 0x475   :  { %v632_v10 = vpop.f32.mrf.mxu0 }
 0x476   :  { %v636_v11 = vpack.c.bf16 %v635_v9, %v635_v9 }
 0x477   :  { %v1126_v12 = vpop.f32.mrf.mxu0 }
 0x478   :  { %1144 = vmatmul.mubr.bf16.vlgmr.msra.gmra.mxu1 %v636_v11 }
 0x479   :  { %1175 = vmatprep.mubr.msk.bf16.mxu1 %vm1243_vm1, %v1242_v2  ;;  %1168 = vmatpush3.bf16.msra.mxu1 %v1214_v15 }
 0x47a   :  { %1169 = vmatprep.subr.bf16.mxu1 %v1242_v2 }
 0x47d   :  { %1170 = vmatpush3.bf16.msra.mxu1 %v1215_v16 }
 0x47e   :  { %1171 = vmatprep.subr.bf16.mxu1 %v1242_v2 }
 0x481   :  { %1172 = vmatpush3.bf16.msra.mxu1 %v1216_v25 }
 0x482   :  { %1173 = vmatprep.subr.bf16.mxu1 %v1242_v2  ;;  %v1004_v2 = vld [vmem:[%s1539_s13] ss:$0 sm:$0xff] }
 0x485   :  { %1174 = vmatpush3.bf16.msra.mxu1 %v1217_v26 }
 0x538   :  { %v742_v18 = vpop.f32.mrf.mxu1 }
 0x539   :  { %v743_v19 = vadd.f32 %v986_v17, %v742_v18 }
 0x53a   :  { %v1145_v20 = vpop.f32.mrf.mxu1 }
 0x53b   :  { %v748_v21 = vmax.f32 %v743_v19, 0.0 }
 0x53c   :  { %v745_v22 = vpop.f32.mrf.mxu1 }
 0x53d   :  { %v749_v23 = vpack.c.bf16 %v748_v21, %v748_v21 }
 0x53e   :  { %v1146_v24 = vpop.f32.mrf.mxu1 }
 0x53f   :  { %1164 = vmatmul.mubr.bf16.vlgmr.msra.gmra.mxu0 %v749_v23 }
 0x5ff   :  { %v855_v28 = vpop.f32.mrf.mxu0 }
 0x600   :  { %v856_v29 = vadd.f32 %v995_v27, %v855_v28 }
 0x601   :  { %v1165_v30 = vpop.f32.mrf.mxu0 }
 0x602   :  { %v861_v31 = vmax.f32 %v856_v29, 0.0 }
 0x603   :  { %v858_v32 = vpop.f32.mrf.mxu0 }
 0x604   :  { %v862_v33 = vpack.c.bf16 %v861_v31, %v861_v31 }
 0x605   :  { %v1166_v34 = vpop.f32.mrf.mxu0 }
 0x606   :  { %1176 = vmatmul.mubr.msk.bf16.vlgmr.msra.gmra.mxu1 %vm902_vm7, %v862_v33 }
 0x6c6   :  { %v940_v35 = vpop.f32.mrf.mxu1 }
 0x6c7   :  { %v941_v36 = vadd.f32 %v1004_v2, %v940_v35 }
 0x6c8   :  { %v1177_v37 = vpop.f32.mrf.mxu1 }
 0x6c9   :  { %946 = vst [vmem:[#allocation2] sm:$0x3] %v941_v36 }
 0x6ca   :  { %v943_v38 = vpop.f32.mrf.mxu1 }
 0x6cb   :  { %1231 = shalt.err (!%p1228_p4)
}
 0x6cc   :  { %956 = dma.vmem_to_hbm [thread:$0]  %s954_s12, 32, %s1540_s14, [#allocation3]   ;;  %v1178_v39 = vpop.f32.mrf.mxu1 }
 0x6cd   :  { %1240 = dma.done.wait [#allocation3], 32  }
 0x6ce   :  { %1241 = vsyncadd [#allocation3], 4294967264 }
 0x6cf   :  { %960 = vsyncpa [#allocation3], 1 }

</bundles_post_ra>
